<compile_context>
chip_gen: v5e
topology: v5e:2x2
jax: 0.10.0
libtpu: 0.0.40
codegen_flags: <defaults>
</compile_context>

<pallas_src>
import functools
import numpy as np

import jax
import jax.numpy as jnp
from jax.experimental import pallas as pl
from jax.experimental.pallas import tpu as pltpu

# ----------------------------- KAN constants -------------------------------
N_CONVS = 5                        # KAN_Convolutional_Layer(n_convs=5)
KH = KW = 3
KK = KH * KW                       # 9 inputs per KANLinear
GRID_SIZE = 5
SPLINE_ORDER = 3
N_BASIS = GRID_SIZE + SPLINE_ORDER            # 8 spline bases per input feature
N_L0 = GRID_SIZE + 2 * SPLINE_ORDER           # 11 degree-0 bases per feature
GRID_RANGE = (-1.0, 1.0)
_H = (GRID_RANGE[1] - GRID_RANGE[0]) / GRID_SIZE
# knots t_0..t_11 (identical for every feature): t_m = grid_min + (m - order)*h
_GRID_NP = (np.arange(-SPLINE_ORDER, GRID_SIZE + SPLINE_ORDER + 1,
                      dtype=np.float32) * _H + GRID_RANGE[0])          # (12,)

N_IN = KK + 1                      # 9 patch features + one ones-row
N_ROWS_B = ((KK * N_L0 + 7) // 8) * 8         # 99 -> 104 (sublane aligned)
N_OUT_PAD = 8                      # 5 conv kernels padded to 8 output rows
MAX_ROW_TILE = 1024                # pooled positions per grid step

# Cross-row contamination from the sublane shift only reaches basis rows
# j >= N_BASIS, which must all carry zero weight:
assert N_L0 - N_BASIS >= SPLINE_ORDER


# --------------------------- constant tables ---------------------------------
def _build_expand_table():
    """(104, 10) table: u = expand @ [p; 1] gives u[f*11+j] = p[f] - t_j."""
    expand = np.zeros((N_ROWS_B, N_IN), np.float32)
    for f in range(KK):
        for j in range(N_L0):
            r = f * N_L0 + j
            expand[r, f] = 1.0
            expand[r, KK] = -float(_GRID_NP[j])          # -t_j via the ones row
    return expand


_EXPAND_NP = _build_expand_table()


# --------------------------- Pallas kernel 1 ---------------------------------
def make_conv_pool_kernel(roll_shift):
    """Fused KAN-conv (all 5 kernels) + MaxPool(1,2) for a tile of pooled rows.

    roll_shift: amount for pltpu.roll implementing row r <- row r+1 along the
    sublane axis, or None to use a slice+concat shift instead.
    """
    if roll_shift is None:
        def shift_up(b):                       # guaranteed-lowering fallback
            return jnp.concatenate([b[1:, :], jnp.zeros_like(b[:1, :])], axis=0)
    else:
        def shift_up(b):                       # XLU rotate, nearly free
            return pltpu.roll(b, roll_shift, 0)

    def kernel(pa_ref, pb_ref, expand_ref, wb_ref, wsp_ref, out_ref):
        t = out_ref.shape[-1]
        # Both pool candidates evaluated in one pass: (10, 2T), positions on lanes.
        p = jnp.concatenate([pa_ref[...], pb_ref[...]], axis=-1)
        # u[f*11+j, :] = x_f - t_j  (the ones row of p carries the -t_j column);
        # one small MXU matmul replaces per-feature broadcast + subtract.
        u = jnp.dot(expand_ref[...], p, preferred_element_type=jnp.float32)  # (104, 2T)
        # Cox-de-Boor on a uniform grid, vectorized over all features at once:
        #   B_{j,0} = 1[0 <= u < h]
        #   B_{j,k} = v*B_{j,k-1} + (c_k - v)*B_{j+1,k-1},  v = u/(k h), c_k=(k+1)/k
        b = jnp.logical_and(u >= 0.0, u < _H).astype(jnp.float32)
        for k in range(1, SPLINE_ORDER + 1):
            v = u * (1.0 / (k * _H))
            b = v * b + ((k + 1.0) / k - v) * shift_up(b)
        # Base path + spline path as two accumulating MXU matmuls (no concat /
        # relayout of the 104-row spline block; MXU has plenty of slack).
        out2 = (jnp.dot(wsp_ref[...], b, preferred_element_type=jnp.float32) +
                jnp.dot(wb_ref[...], jax.nn.silu(p),
                        preferred_element_type=jnp.float32))             # (8, 2T)
        # MaxPool(1,2): max over the two candidate halves; lane-dense (8, T) store.
        out_ref[...] = jnp.maximum(out2[:, :t], out2[:, t:])

    return kernel


# --------------------------- Pallas kernel 2 ---------------------------------
def mlp_kernel(x_ref, w1_ref, b1_ref, w2t_ref, b2_ref, out_ref):
    """Flatten -> Linear(F, 256) -> Linear(256, 2) -> log_softmax (2 classes)."""
    x = x_ref[...]                                                     # (B, F)
    h = jnp.dot(x, w1_ref[...], preferred_element_type=jnp.float32) + b1_ref[...]
    w2t = w2t_ref[...]                                                 # (2, 256)
    b2 = b2_ref[...]                                                   # (1, 2)
    # 2-wide head on the VPU (an N=2 MXU matmul would waste >98% of the array).
    l0 = jnp.sum(h * w2t[0:1, :], axis=-1, keepdims=True) + b2[:, 0:1]
    l1 = jnp.sum(h * w2t[1:2, :], axis=-1, keepdims=True) + b2[:, 1:2]
    m = jnp.maximum(l0, l1)
    z0 = l0 - m
    z1 = l1 - m
    lse = jnp.log(jnp.exp(z0) + jnp.exp(z1))
    out_ref[...] = jnp.concatenate([z0 - lse, z1 - lse], axis=-1)      # (B, 2)


# ------------------------------ helpers ---------------------------------------
def _round_up(x, m):
    return ((x + m - 1) // m) * m


def _pick_row_tile(n_rows):
    # Lane-dense tiles (multiples of 128) amortize the ~0.35us per-step
    # overhead; aim for >=4 grid steps when the problem is big enough so v7x's
    # two TensorCores each get >=2 iterations (keeps double-buffering alive).
    tile = _round_up(pl.cdiv(n_rows, 4), 128)
    return max(128, min(MAX_ROW_TILE, tile))


def _probe_sublane_roll_shift():
    """Determine how (and whether) pltpu.roll implements a one-row sublane
    shift-up on this backend.  Returns the shift amount, or None => fallback."""
    n, lanes = N_ROWS_B, 128
    x_np = np.arange(n * lanes, dtype=np.float32).reshape(n, lanes)
    want = np.roll(x_np, -1, axis=0)                  # want[r] = x[r + 1]
    for shift in (n - 1, 1):
        def krn(x_ref, o_ref, _s=shift):
            o_ref[...] = pltpu.roll(x_ref[...], _s, 0)
        try:
            y = pl.pallas_call(
                krn, out_shape=jax.ShapeDtypeStruct((n, lanes), jnp.float32),
            )(jnp.asarray(x_np))
            y = np.asarray(jax.block_until_ready(y))
        except Exception:
            return None                               # lowering unsupported
        if np.array_equal(y, want):
            return shift
    return None


# ------------------------------ wrapper ---------------------------------------
def kanc_mlp_forward(x1, x2, x3, params, roll_shift=None):
    # ---- torch.cat((x1, x2, x3), dim=3): NCHW concat along W
    x = jnp.concatenate([x1, x2, x3], axis=3).astype(jnp.float32)
    B, C, H, W = x.shape

    # conv (k=3, stride=2, pad=1) and pool (k=(1,2), stride=(2,2)) geometry
    H_out = (H + 2 - KH) // 2 + 1
    W_out = (W + 2 - KW) // 2 + 1
    H_p = (H_out - 1) // 2 + 1
    W_p = (W_out - 2) // 2 + 1
    n_rows = B * C * H_p * W_p

    # ---- im2col, feature-major (9, N), ONLY at conv positions the pool uses:
    #      pooled (hp, wp) = max of conv at (2hp, 2wp) and (2hp, 2wp+1).
    x_pad = jnp.pad(x, ((0, 0), (0, 0), (1, 1), (1, 1)))

    def _extract(col_off):                   # col_off 0 -> left cand, 2 -> right
        rows = []
        for kh in range(KH):
            for kw in range(KW):
                rows.append(x_pad[:, :,
                                  kh: kh + 4 * (H_p - 1) + 1: 4,
                                  kw + col_off: kw + col_off + 4 * (W_p - 1) + 1: 4])
        # (9, B, C, H_p, W_p) -> (9, N); columns ordered (b, c, hp, wp)
        return jnp.stack(rows, axis=0).reshape(KK, n_rows)

    row_tile = _pick_row_tile(n_rows)
    n_pad = _round_up(n_rows, row_tile)

    def _pack(p9):                           # (9, N) -> (10, n_pad) with ones row
        p10 = jnp.concatenate([p9, jnp.ones((1, n_rows), jnp.float32)], axis=0)
        return jnp.pad(p10, ((0, 0), (0, n_pad - n_rows)))

    pa = _pack(_extract(0))
    pb = _pack(_extract(2))

    # ---- fused weights in the feature-major layout
    #      base: (8, 10); spline: (8, 104), column f*11+j = scaled_spline_w[f,j]
    wb = jnp.pad(params["base_w"].T, ((0, N_OUT_PAD - N_CONVS), (0, 1)))
    wsp = jnp.transpose(params["spline_w"], (2, 0, 1))                  # (5, 9, 8)
    wsp = jnp.pad(wsp, ((0, 0), (0, 0), (0, N_L0 - N_BASIS)))
    wsp = wsp.reshape(N_CONVS, KK * N_L0)
    wsp = jnp.pad(wsp, ((0, N_OUT_PAD - N_CONVS), (0, N_ROWS_B - KK * N_L0)))

    conv_out = pl.pallas_call(
        make_conv_pool_kernel(roll_shift),
        out_shape=jax.ShapeDtypeStruct((N_OUT_PAD, n_pad), jnp.float32),
        grid=(n_pad // row_tile,),
        in_specs=[
            pl.BlockSpec((N_IN, row_tile), lambda i: (0, i)),
            pl.BlockSpec((N_IN, row_tile), lambda i: (0, i)),
            pl.BlockSpec((N_ROWS_B, N_IN), lambda i: (0, 0)),
            pl.BlockSpec((N_OUT_PAD, N_IN), lambda i: (0, 0)),
            pl.BlockSpec((N_OUT_PAD, N_ROWS_B), lambda i: (0, 0)),
        ],
        out_specs=pl.BlockSpec((N_OUT_PAD, row_tile), lambda i: (0, i)),
        compiler_params=pltpu.CompilerParams(
            dimension_semantics=("parallel",),
            vmem_limit_bytes=32 * 1024 * 1024),
    )(pa, pb, jnp.asarray(_EXPAND_NP), wb, wsp)

    # ---- (kern, b, c*hp*wp) -> (b, kern, c*hp*wp): tiny inter-kernel move; the
    #      torch flatten order (c, kern, hp, wp) is recovered by permuting w1's
    #      rows once (trace-time) instead of transposing the activation in HBM.
    feats = conv_out[:N_CONVS, :n_rows].reshape(N_CONVS, B, C * H_p * W_p)
    x_flat = jnp.transpose(feats, (1, 0, 2)).reshape(B, N_CONVS * C * H_p * W_p)

    s = H_p * W_p
    perm = np.arange(C * N_CONVS * s).reshape(C, N_CONVS, s)
    perm = perm.transpose(1, 0, 2).reshape(-1)        # perm[ours] = torch index
    w1_perm = params["w1"][perm, :]

    out = pl.pallas_call(
        mlp_kernel,
        out_shape=jax.ShapeDtypeStruct((B, 2), jnp.float32),
    )(x_flat, w1_perm, params["b1"], params["w2"].T, params["b2"])
    return out


# ----------------------------- parameter init --------------------------------
def init_params(key, in_features):
    ks = jax.random.split(key, 7)
    # KANLinear(9 -> 1) per conv kernel, stacked over the 5 kernels.
    base_w = jax.random.normal(ks[0], (KK, N_CONVS), jnp.float32) * 0.3
    spline_w = jax.random.normal(ks[1], (KK, N_BASIS, N_CONVS), jnp.float32) * 0.1
    spline_scaler = 1.0 + 0.3 * jax.random.normal(ks[2], (KK, N_CONVS), jnp.float32)
    spline_w_scaled = spline_w * spline_scaler[:, None, :]

    w1 = jax.random.normal(ks[3], (in_features, 256), jnp.float32) / np.sqrt(in_features)
    b1 = jax.random.normal(ks[4], (1, 256), jnp.float32) * 0.01
    w2 = jax.random.normal(ks[5], (256, 2), jnp.float32) / np.sqrt(256.0)
    b2 = jax.random.normal(ks[6], (1, 2), jnp.float32) * 0.01
    return {"base_w": base_w, "spline_w": spline_w_scaled,
            "w1": w1, "b1": b1, "w2": w2, "b2": b2}


# --------------------------- pure-JAX reference -------------------------------
def _reference_forward(x1, x2, x3, params):
    """Plain-JAX mirror of the PyTorch module; used only for the self-check."""
    hi = jax.lax.Precision.HIGHEST
    x = jnp.concatenate([x1, x2, x3], axis=3).astype(jnp.float32)
    B, C, H, W = x.shape
    H_out = (H + 2 - KH) // 2 + 1
    W_out = (W + 2 - KW) // 2 + 1
    x_pad = jnp.pad(x, ((0, 0), (0, 0), (1, 1), (1, 1)))
    cols = []
    for kh in range(KH):
        for kw in range(KW):
            cols.append(x_pad[:, :, kh:kh + 2 * H_out - 1:2, kw:kw + 2 * W_out - 1:2])
    patches = jnp.stack(cols, axis=-1).reshape(-1, KK)
    g = jnp.asarray(_GRID_NP)[None, :]                                 # (1, 12)
    out = jnp.dot(jax.nn.silu(patches), params["base_w"], precision=hi)
    for i in range(KK):
        xc = patches[:, i:i + 1]
        bases = ((xc >= g[:, :-1]) & (xc < g[:, 1:])).astype(jnp.float32)
        for k in range(1, SPLINE_ORDER + 1):
            left = (xc - g[:, :-(k + 1)]) / (g[:, k:-1] - g[:, :-(k + 1)])
            right = (g[:, k + 1:] - xc) / (g[:, k + 1:] - g[:, 1:-k])
            bases = left * bases[:, :-1] + right * bases[:, 1:]
        out = out + jnp.dot(bases, params["spline_w"][i], precision=hi)
    conv = (out.reshape(B, C, H_out, W_out, N_CONVS)
            .transpose(0, 1, 4, 2, 3)
            .reshape(B, C * N_CONVS, H_out, W_out))
    H_p = (H_out - 1) // 2 + 1
    W_p = (W_out - 2) // 2 + 1
    pooled = jnp.maximum(conv[:, :, 0:2 * H_p - 1:2, 0:2 * W_p - 1:2],
                         conv[:, :, 0:2 * H_p - 1:2, 1:2 * W_p:2])
    flat = pooled.reshape(B, -1)
    h = jnp.dot(flat, params["w1"], precision=hi) + params["b1"]
    logits = jnp.dot(h, params["w2"], precision=hi) + params["b2"]
    return jax.nn.log_softmax(logits, axis=1)


if __name__ == "__main__":
    key = jax.random.PRNGKey(0)
    kx1, kx2, kx3, kp = jax.random.split(key, 4)

    B, C, H, Wpart = 2, 2, 16, 8               # x1/x2/x3: (2, 2, 16, 8) NCHW
    x1 = jax.random.normal(kx1, (B, C, H, Wpart), jnp.float32)
    x2 = jax.random.normal(kx2, (B, C, H, Wpart), jnp.float32)
    x3 = jax.random.normal(kx3, (B, C, H, Wpart), jnp.float32)

    # derive the LazyLinear input size exactly as the forward pass implies
    W = 3 * Wpart
    H_out = (H + 2 - KH) // 2 + 1
    W_out = (W + 2 - KW) // 2 + 1
    H_p = (H_out - 1) // 2 + 1
    W_p = (W_out - 2) // 2 + 1
    in_features = C * N_CONVS * H_p * W_p      # = 240 for these shapes

    params = init_params(kp, in_features)

    roll_shift = _probe_sublane_roll_shift()   # XLU roll if available, else concat
    fwd = jax.jit(functools.partial(kanc_mlp_forward, params=params,
                                    roll_shift=roll_shift))
    out = fwd(x1, x2, x3)
    jax.block_until_ready(out)
    assert out.shape == (B, 2)

    # numerical self-check against the pure-JAX reference of the same module.
    # (tolerance leaves headroom for possible reduced-precision MXU passes on
    #  f32 matmuls; any layout / permutation / shift bug produces O(1) errors.)
    ref = _reference_forward(x1, x2, x3, params)
    assert bool(jnp.all(jnp.isfinite(out)))
    err = float(jnp.max(jnp.abs(out - jnp.asarray(ref))))
    assert err < 3e-2, f"max abs err {err}"
    print("KERNEL_OK")
</pallas_src>

<mosaic_0001>
module attributes {stable_mosaic.version = 11 : i64} {
  func.func @krn(%arg0: memref<104x128xf32, #tpu.memory_space<vmem>>, %arg1: memref<104x128xf32, #tpu.memory_space<vmem>>) attributes {dimension_semantics = [], scalar_prefetch = 0 : i64, scratch_operands = 0 : i64, tpu.core_type = #tpu.core_type<tc>} {
    %c0 = arith.constant 0 : index
    %c0_0 = arith.constant 0 : index
    %0 = vector.load %arg0[%c0, %c0_0] : memref<104x128xf32, #tpu.memory_space<vmem>>, vector<104x128xf32>
    %c103_i32 = arith.constant 103 : i32
    %1 = tpu.dynamic_rotate %0 by %c103_i32 dim 0 : vector<104x128xf32>, i32 -> vector<104x128xf32>
    %c0_1 = arith.constant 0 : index
    %c0_2 = arith.constant 0 : index
    %2 = vector.load %arg1[%c0_1, %c0_2] : memref<104x128xf32, #tpu.memory_space<vmem>>, vector<104x128xf32>
    tpu.vector_store %arg1[%c0_1, %c0_2], %1 {strides = array<i32>} : memref<104x128xf32, #tpu.memory_space<vmem>>, vector<104x128xf32>,
    return
  }
}

module attributes {stable_mosaic.version = 11 : i64} {
  func.func @kernel(%arg0: i32, %arg1: memref<10x128xf32, #tpu.memory_space<vmem>>, %arg2: memref<10x128xf32, #tpu.memory_space<vmem>>, %arg3: memref<104x10xf32, #tpu.memory_space<vmem>>, %arg4: memref<8x10xf32, #tpu.memory_space<vmem>>, %arg5: memref<8x104xf32, #tpu.memory_space<vmem>>, %arg6: memref<8x128xf32, #tpu.memory_space<vmem>>) attributes {dimension_semantics = [#tpu.dimension_semantics<parallel>], iteration_bounds = array<i64: 1>, scalar_prefetch = 0 : i64, scratch_operands = 0 : i64, tpu.core_type = #tpu.core_type<tc>, window_params = [{transform_indices = @transform_0, window_bounds = array<i64: 10, 128>}, {transform_indices = @transform_1, window_bounds = array<i64: 10, 128>}, {pipeline_mode = #tpu.pipeline_mode<synchronous>, transform_indices = @transform_2, window_bounds = array<i64: 104, 10>}, {pipeline_mode = #tpu.pipeline_mode<synchronous>, transform_indices = @transform_3, window_bounds = array<i64: 8, 10>}, {pipeline_mode = #tpu.pipeline_mode<synchronous>, transform_indices = @transform_4, window_bounds = array<i64: 8, 104>}, {transform_indices = @transform_5, window_bounds = array<i64: 8, 128>}]} {
    %c0 = arith.constant 0 : index
    %c0_0 = arith.constant 0 : index
    %0 = vector.load %arg1[%c0, %c0_0] : memref<10x128xf32, #tpu.memory_space<vmem>>, vector<10x128xf32>
    %c0_1 = arith.constant 0 : index
    %c0_2 = arith.constant 0 : index
    %1 = vector.load %arg2[%c0_1, %c0_2] : memref<10x128xf32, #tpu.memory_space<vmem>>, vector<10x128xf32>
    %2 = tpu.concatenate %0, %1 in 1 : vector<10x128xf32>, vector<10x128xf32> -> vector<10x256xf32>
    %c0_3 = arith.constant 0 : index
    %c0_4 = arith.constant 0 : index
    %3 = vector.load %arg3[%c0_3, %c0_4] : memref<104x10xf32, #tpu.memory_space<vmem>>, vector<104x10xf32>
    %cst = arith.constant dense<0.000000e+00> : vector<104x256xf32>
    %4 = tpu.matmul %3, %2, %cst {dimension_numbers = #tpu.dot_dimension_numbers<[1], [0], [0], [1], [0, 0, 1, 1], [], []>} : vector<104x10xf32>, vector<10x256xf32>, vector<104x256xf32> -> vector<104x256xf32>
    %cst_5 = arith.constant 0.000000e+00 : f32
    %5 = vector.broadcast %cst_5 : f32 to vector<104x256xf32>
    %6 = arith.cmpf oge, %4, %5 : vector<104x256xf32>
    %cst_6 = arith.constant 4.000000e-01 : f32
    %7 = vector.broadcast %cst_6 : f32 to vector<104x256xf32>
    %8 = arith.cmpf olt, %4, %7 : vector<104x256xf32>
    %9 = arith.andi %6, %8 : vector<104x256xi1>
    %10 = arith.extui %9 : vector<104x256xi1> to vector<104x256xi32>
    %11 = arith.sitofp %10 : vector<104x256xi32> to vector<104x256xf32>
    %cst_7 = arith.constant 2.500000e+00 : f32
    %12 = vector.broadcast %cst_7 : f32 to vector<104x256xf32>
    %13 = arith.mulf %4, %12 : vector<104x256xf32>
    %14 = arith.mulf %13, %11 : vector<104x256xf32>
    %cst_8 = arith.constant 2.000000e+00 : f32
    %15 = vector.broadcast %cst_8 : f32 to vector<104x256xf32>
    %16 = arith.subf %15, %13 : vector<104x256xf32>
    %17 = vector.extract_strided_slice %11 {offsets = [1, 0], sizes = [103, 256], strides = [1, 1]} : vector<104x256xf32> to vector<103x256xf32>
    %cst_9 = arith.constant 0.000000e+00 : f32
    %18 = vector.broadcast %cst_9 : f32 to vector<1x256xf32>
    %19 = tpu.concatenate %17, %18 in 0 : vector<103x256xf32>, vector<1x256xf32> -> vector<104x256xf32>
    %20 = arith.mulf %16, %19 : vector<104x256xf32>
    %21 = arith.addf %14, %20 : vector<104x256xf32>
    %cst_10 = arith.constant 1.250000e+00 : f32
    %22 = vector.broadcast %cst_10 : f32 to vector<104x256xf32>
    %23 = arith.mulf %4, %22 : vector<104x256xf32>
    %24 = arith.mulf %23, %21 : vector<104x256xf32>
    %cst_11 = arith.constant 1.500000e+00 : f32
    %25 = vector.broadcast %cst_11 : f32 to vector<104x256xf32>
    %26 = arith.subf %25, %23 : vector<104x256xf32>
    %27 = vector.extract_strided_slice %21 {offsets = [1, 0], sizes = [103, 256], strides = [1, 1]} : vector<104x256xf32> to vector<103x256xf32>
    %cst_12 = arith.constant 0.000000e+00 : f32
    %28 = vector.broadcast %cst_12 : f32 to vector<1x256xf32>
    %29 = tpu.concatenate %27, %28 in 0 : vector<103x256xf32>, vector<1x256xf32> -> vector<104x256xf32>
    %30 = arith.mulf %26, %29 : vector<104x256xf32>
    %31 = arith.addf %24, %30 : vector<104x256xf32>
    %cst_13 = arith.constant 0.833333313 : f32
    %32 = vector.broadcast %cst_13 : f32 to vector<104x256xf32>
    %33 = arith.mulf %4, %32 : vector<104x256xf32>
    %34 = arith.mulf %33, %31 : vector<104x256xf32>
    %cst_14 = arith.constant 1.33333337 : f32
    %35 = vector.broadcast %cst_14 : f32 to vector<104x256xf32>
    %36 = arith.subf %35, %33 : vector<104x256xf32>
    %37 = vector.extract_strided_slice %31 {offsets = [1, 0], sizes = [103, 256], strides = [1, 1]} : vector<104x256xf32> to vector<103x256xf32>
    %cst_15 = arith.constant 0.000000e+00 : f32
    %38 = vector.broadcast %cst_15 : f32 to vector<1x256xf32>
    %39 = tpu.concatenate %37, %38 in 0 : vector<103x256xf32>, vector<1x256xf32> -> vector<104x256xf32>
    %40 = arith.mulf %36, %39 : vector<104x256xf32>
    %41 = arith.addf %34, %40 : vector<104x256xf32>
    %c0_16 = arith.constant 0 : index
    %c0_17 = arith.constant 0 : index
    %42 = vector.load %arg5[%c0_16, %c0_17] : memref<8x104xf32, #tpu.memory_space<vmem>>, vector<8x104xf32>
    %cst_18 = arith.constant dense<0.000000e+00> : vector<8x256xf32>
    %43 = tpu.matmul %42, %41, %cst_18 {dimension_numbers = #tpu.dot_dimension_numbers<[1], [0], [0], [1], [0, 0, 1, 1], [], []>} : vector<8x104xf32>, vector<104x256xf32>, vector<8x256xf32> -> vector<8x256xf32>
    %c0_19 = arith.constant 0 : index
    %c0_20 = arith.constant 0 : index
    %44 = vector.load %arg4[%c0_19, %c0_20] : memref<8x10xf32, #tpu.memory_space<vmem>>, vector<8x10xf32>
    %45 = arith.negf %2 : vector<10x256xf32>
    %46 = math.exp %45 : vector<10x256xf32>
    %cst_21 = arith.constant 1.000000e+00 : f32
    %47 = vector.broadcast %cst_21 : f32 to vector<10x256xf32>
    %48 = arith.addf %47, %46 : vector<10x256xf32>
    %49 = arith.divf %47, %48 : vector<10x256xf32>
    %50 = arith.mulf %2, %49 : vector<10x256xf32>
    %cst_22 = arith.constant dense<0.000000e+00> : vector<8x256xf32>
    %51 = tpu.matmul %44, %50, %cst_22 {dimension_numbers = #tpu.dot_dimension_numbers<[1], [0], [0], [1], [0, 0, 1, 1], [], []>} : vector<8x10xf32>, vector<10x256xf32>, vector<8x256xf32> -> vector<8x256xf32>
    %52 = arith.addf %43, %51 : vector<8x256xf32>
    %53 = vector.extract_strided_slice %52 {offsets = [0, 0], sizes = [8, 128], strides = [1, 1]} : vector<8x256xf32> to vector<8x128xf32>
    %54 = vector.extract_strided_slice %52 {offsets = [0, 128], sizes = [8, 128], strides = [1, 1]} : vector<8x256xf32> to vector<8x128xf32>
    %55 = arith.maximumf %53, %54 : vector<8x128xf32>
    %c0_23 = arith.constant 0 : index
    %c0_24 = arith.constant 0 : index
    %56 = vector.load %arg6[%c0_23, %c0_24] : memref<8x128xf32, #tpu.memory_space<vmem>>, vector<8x128xf32>
    tpu.vector_store %arg6[%c0_23, %c0_24], %55 {strides = array<i32>} : memref<8x128xf32, #tpu.memory_space<vmem>>, vector<8x128xf32>,
    return
  }
  func.func @transform_0(%arg0: i32) -> (i32, i32) {
    %c0_i32 = arith.constant 0 : i32
    %c0_i32_0 = arith.constant 0 : i32
    return %c0_i32, %arg0 : i32, i32
  }
  func.func @transform_1(%arg0: i32) -> (i32, i32) {
    %c0_i32 = arith.constant 0 : i32
    %c0_i32_0 = arith.constant 0 : i32
    return %c0_i32, %arg0 : i32, i32
  }
  func.func @transform_2(%arg0: i32) -> (i32, i32) {
    %c0_i32 = arith.constant 0 : i32
    %c0_i32_0 = arith.constant 0 : i32
    %c0_i32_1 = arith.constant 0 : i32
    return %c0_i32, %c0_i32_0 : i32, i32
  }
  func.func @transform_3(%arg0: i32) -> (i32, i32) {
    %c0_i32 = arith.constant 0 : i32
    %c0_i32_0 = arith.constant 0 : i32
    %c0_i32_1 = arith.constant 0 : i32
    return %c0_i32, %c0_i32_0 : i32, i32
  }
  func.func @transform_4(%arg0: i32) -> (i32, i32) {
    %c0_i32 = arith.constant 0 : i32
    %c0_i32_0 = arith.constant 0 : i32
    %c0_i32_1 = arith.constant 0 : i32
    return %c0_i32, %c0_i32_0 : i32, i32
  }
  func.func @transform_5(%arg0: i32) -> (i32, i32) {
    %c0_i32 = arith.constant 0 : i32
    %c0_i32_0 = arith.constant 0 : i32
    return %c0_i32, %arg0 : i32, i32
  }
}

module attributes {stable_mosaic.version = 11 : i64} {
  func.func @mlp_kernel(%arg0: memref<2x240xf32, #tpu.memory_space<vmem>>, %arg1: memref<240x256xf32, #tpu.memory_space<vmem>>, %arg2: memref<1x256xf32, #tpu.memory_space<vmem>>, %arg3: memref<2x256xf32, #tpu.memory_space<vmem>>, %arg4: memref<1x2xf32, #tpu.memory_space<vmem>>, %arg5: memref<2x2xf32, #tpu.memory_space<vmem>>) attributes {dimension_semantics = [], scalar_prefetch = 0 : i64, scratch_operands = 0 : i64, tpu.core_type = #tpu.core_type<tc>} {
    %c0 = arith.constant 0 : index
    %c0_0 = arith.constant 0 : index
    %0 = vector.load %arg0[%c0, %c0_0] : memref<2x240xf32, #tpu.memory_space<vmem>>, vector<2x240xf32>
    %c0_1 = arith.constant 0 : index
    %c0_2 = arith.constant 0 : index
    %1 = vector.load %arg1[%c0_1, %c0_2] : memref<240x256xf32, #tpu.memory_space<vmem>>, vector<240x256xf32>
    %cst = arith.constant dense<0.000000e+00> : vector<2x256xf32>
    %2 = tpu.matmul %0, %1, %cst {dimension_numbers = #tpu.dot_dimension_numbers<[1], [0], [0], [1], [0, 0, 1, 1], [], []>} : vector<2x240xf32>, vector<240x256xf32>, vector<2x256xf32> -> vector<2x256xf32>
    %c0_3 = arith.constant 0 : index
    %c0_4 = arith.constant 0 : index
    %3 = vector.load %arg2[%c0_3, %c0_4] : memref<1x256xf32, #tpu.memory_space<vmem>>, vector<1x256xf32>
    %4 = vector.broadcast %3 : vector<1x256xf32> to vector<2x256xf32>
    %5 = arith.addf %2, %4 : vector<2x256xf32>
    %c0_5 = arith.constant 0 : index
    %c0_6 = arith.constant 0 : index
    %6 = vector.load %arg3[%c0_5, %c0_6] : memref<2x256xf32, #tpu.memory_space<vmem>>, vector<2x256xf32>
    %c0_7 = arith.constant 0 : index
    %c0_8 = arith.constant 0 : index
    %7 = vector.load %arg4[%c0_7, %c0_8] : memref<1x2xf32, #tpu.memory_space<vmem>>, vector<1x2xf32>
    %8 = vector.extract_strided_slice %6 {offsets = [0, 0], sizes = [1, 256], strides = [1, 1]} : vector<2x256xf32> to vector<1x256xf32>
    %9 = vector.broadcast %8 : vector<1x256xf32> to vector<2x256xf32>
    %10 = arith.mulf %5, %9 : vector<2x256xf32>
    %cst_9 = arith.constant dense<0.000000e+00> : vector<2xf32>
    %11 = vector.multi_reduction <add>, %10, %cst_9 [1] : vector<2x256xf32> to vector<2xf32>
    %12 = vector.shape_cast %11 : vector<2xf32> to vector<2x1xf32>
    %13 = vector.extract_strided_slice %7 {offsets = [0, 0], sizes = [1, 1], strides = [1, 1]} : vector<1x2xf32> to vector<1x1xf32>
    %14 = vector.broadcast %13 : vector<1x1xf32> to vector<2x1xf32>
    %15 = arith.addf %12, %14 : vector<2x1xf32>
    %16 = vector.extract_strided_slice %6 {offsets = [1, 0], sizes = [1, 256], strides = [1, 1]} : vector<2x256xf32> to vector<1x256xf32>
    %17 = vector.broadcast %16 : vector<1x256xf32> to vector<2x256xf32>
    %18 = arith.mulf %5, %17 : vector<2x256xf32>
    %cst_10 = arith.constant dense<0.000000e+00> : vector<2xf32>
    %19 = vector.multi_reduction <add>, %18, %cst_10 [1] : vector<2x256xf32> to vector<2xf32>
    %20 = vector.shape_cast %19 : vector<2xf32> to vector<2x1xf32>
    %21 = vector.extract_strided_slice %7 {offsets = [0, 1], sizes = [1, 1], strides = [1, 1]} : vector<1x2xf32> to vector<1x1xf32>
    %22 = vector.broadcast %21 : vector<1x1xf32> to vector<2x1xf32>
    %23 = arith.addf %20, %22 : vector<2x1xf32>
    %24 = arith.maximumf %15, %23 : vector<2x1xf32>
    %25 = arith.subf %15, %24 : vector<2x1xf32>
    %26 = arith.subf %23, %24 : vector<2x1xf32>
    %27 = math.exp %25 : vector<2x1xf32>
    %28 = math.exp %26 : vector<2x1xf32>
    %29 = arith.addf %27, %28 : vector<2x1xf32>
    %30 = math.log %29 : vector<2x1xf32>
    %31 = arith.subf %25, %30 : vector<2x1xf32>
    %32 = arith.subf %26, %30 : vector<2x1xf32>
    %33 = tpu.concatenate %31, %32 in 1 : vector<2x1xf32>, vector<2x1xf32> -> vector<2x2xf32>
    %c0_11 = arith.constant 0 : index
    %c0_12 = arith.constant 0 : index
    %34 = vector.load %arg5[%c0_11, %c0_12] : memref<2x2xf32, #tpu.memory_space<vmem>>, vector<2x2xf32>
    tpu.vector_store %arg5[%c0_11, %c0_12], %33 {strides = array<i32>} : memref<2x2xf32, #tpu.memory_space<vmem>>, vector<2x2xf32>,
    return
  }
}

</mosaic_0001>

<bundles_post_ra>
// kernel: tpu_custom_call.1
= control target key start
LH: loop header
LB: loop body
LE: loop exit
PB: predicated region body
PF: predicated region fallthrough
CT: control target
= control target key end

     0   :  { %6 = vsyncpa [#allocation3], 0  ;;  %s194_s0 = inlined_call_operand.hbm [shape: f32[104,128], index: 0, kind: input, shape index: {}]   ;;  %s195_s1 = inlined_call_operand.hbm [shape: f32[104,128], index: 1, kind: output, shape index: {}]  }
   0x1   :  { %7 = vsyncpa [#allocation4], 0  ;;  %s12_s8 = sshll.u32 %s194_s0, 4  ;;  %s155_s9 = smov [#allocation2]   ;;  %s13_s8 = int_to_ptr.hbm [resolvable:$true] %s12_s8 }
   0x2   :  { %s14_s10 = sshll.u32 %s155_s9, 4  ;;  %s156_s11 = smov 128   ;;  %s15_s10 = int_to_ptr.vmem [resolvable:$true] %s14_s10 }
   0x3   :  { %s157_s12 = smov 8  }
   0x4   :  { %20 = dma.hbm_to_vmem [thread:$0]  %s13_s8, 1664, %s15_s10, [#allocation3], %s156_s11, %s156_s11, %s157_s12  }
   0x5   :  { %151 = dma.done.wait [#allocation3], 1664  }
   0x6   :  { %152 = vsyncadd [#allocation3], 4294965632  ;;  %v51_v0 = vlaneseq  ;;  %v25_v2 = vld [vmem:[#allocation2] sm:$0xff]  ;;  %v26_v3 = vld [vmem:[#allocation2 + $0x8] sm:$0xff]  ;;  %s158_s0 = smov [#allocation5]   ;;  %s86_s16 = sshll.u32 %s195_s1, 4  ;;  %s87_s16 = int_to_ptr.hbm [resolvable:$true] %s86_s16 }
   0x7   :  { %v27_v4 = vld [vmem:[#allocation2 + $0x10] sm:$0xff]  ;;  %v38_v5 = vrot.slane %v25_v2, 1  ;;  %v39_v6 = vrot.slane %v26_v3, 1  ;;  %v28_v8 = vld [vmem:[#allocation2 + $0x18] sm:$0xff]  ;;  %v29_v9 = vld [vmem:[#allocation2 + $0x20] sm:$0xff]  ;;  %s84_s13 = sshll.u32 %s158_s0, 4  ;;  %s85_s13 = int_to_ptr.vmem [resolvable:$true] %s84_s13 }
   0x8   :  { %v52_v1 = vshrl.u32 %v51_v0, 7  ;;  %v40_v7 = vrot.slane %v27_v4, 1  ;;  %v30_v10 = vld [vmem:[#allocation2 + $0x28] sm:$0xff]  ;;  %v41_v11 = vrot.slane %v28_v8, 1  ;;  %v42_v12 = vrot.slane %v29_v9, 1  ;;  %v31_v14 = vld [vmem:[#allocation2 + $0x30] sm:$0xff] }
   0x9   :  { %v43_v13 = vrot.slane %v30_v10, 1  ;;  %v32_v15 = vld [vmem:[#allocation2 + $0x38] sm:$0xff]  ;;  %v33_v16 = vld [vmem:[#allocation2 + $0x40] sm:$0xff]  ;;  %v44_v19 = vrot.slane %v31_v14, 1  ;;  %v34_v21 = vld [vmem:[#allocation2 + $0x48] sm:$0xff] }
   0xa   :  { %vm53_vm0 = vcmp.lt.s32.totalorder %v52_v1, 7  ;;  %v45_v20 = vrot.slane %v32_v15, 1  ;;  %v35_v22 = vld [vmem:[#allocation2 + $0x50] sm:$0xff]  ;;  %v46_v25 = vrot.slane %v33_v16, 1  ;;  %v36_v26 = vld [vmem:[#allocation2 + $0x58] sm:$0xff]  ;;  %v47_v28 = vrot.slane %v34_v21, 1 }
   0xb   :  { %v65_v17 = vsel %vm53_vm0, %v38_v5, %v39_v6  ;;  %v64_v18 = vsel %vm53_vm0, %v39_v6, %v40_v7  ;;  %v63_v23 = vsel %vm53_vm0, %v40_v7, %v41_v11  ;;  %v62_v24 = vsel %vm53_vm0, %v41_v11, %v42_v12  ;;  %v37_v29 = vld [vmem:[#allocation2 + $0x60] sm:$0xff] }
   0xc   :  { %67 = vst [vmem:[#allocation5] sm:$0xff] %v65_v17  ;;  %v61_v27 = vsel %vm53_vm0, %v42_v12, %v43_v13  ;;  %v60_v30 = vsel %vm53_vm0, %v43_v13, %v44_v19  ;;  %v48_v31 = vrot.slane %v35_v22, 1  ;;  %v59_v32 = vsel %vm53_vm0, %v44_v19, %v45_v20 }
   0xd   :  { %68 = vst [vmem:[#allocation5 + $0x8] sm:$0xff] %v64_v18  ;;  %v49_v33 = vrot.slane %v36_v26, 1  ;;  %v58_v34 = vsel %vm53_vm0, %v45_v20, %v46_v25  ;;  %v50_v35 = vrot.slane %v37_v29, 1  ;;  %v57_v36 = vsel %vm53_vm0, %v46_v25, %v47_v28 }
   0xe   :  { %69 = vst [vmem:[#allocation5 + $0x10] sm:$0xff] %v63_v23  ;;  %v56_v37 = vsel %vm53_vm0, %v47_v28, %v48_v31 }
   0xf   :  { %70 = vst [vmem:[#allocation5 + $0x18] sm:$0xff] %v62_v24  ;;  %v55_v38 = vsel %vm53_vm0, %v48_v31, %v49_v33  ;;  %v54_v39 = vsel %vm53_vm0, %v49_v33, %v50_v35  ;;  %v66_v40 = vsel %vm53_vm0, %v50_v35, %v38_v5 }
  0x10   :  { %71 = vst [vmem:[#allocation5 + $0x20] sm:$0xff] %v61_v27 }
  0x11   :  { %72 = vst [vmem:[#allocation5 + $0x28] sm:$0xff] %v60_v30 }
  0x12   :  { %73 = vst [vmem:[#allocation5 + $0x30] sm:$0xff] %v59_v32 }
  0x13   :  { %74 = vst [vmem:[#allocation5 + $0x38] sm:$0xff] %v58_v34 }
  0x14   :  { %75 = vst [vmem:[#allocation5 + $0x40] sm:$0xff] %v57_v36 }
  0x15   :  { %76 = vst [vmem:[#allocation5 + $0x48] sm:$0xff] %v56_v37 }
  0x16   :  { %77 = vst [vmem:[#allocation5 + $0x50] sm:$0xff] %v55_v38 }
  0x17   :  { %78 = vst [vmem:[#allocation5 + $0x58] sm:$0xff] %v54_v39 }
  0x18   :  { %79 = vst [vmem:[#allocation5 + $0x60] sm:$0xff] %v66_v40 }
  0x19   :  { %92 = dma.vmem_to_hbm [thread:$0]  %s85_s13, 1664, %s87_s16, [#allocation4], %s156_s11, %s156_s11, %s157_s12  }
  0x1a   :  { %153 = dma.done.wait [#allocation4], 1664  }
  0x1b   :  { %154 = vsyncadd [#allocation4], 4294965632 }
  0x1c   :  { %97 = vsyncpa [#allocation3], 1 }
  0x1d   :  { %98 = vsyncpa [#allocation4], 1 }

// kernel: kanc_mlp_forward.3
= control target key start
LH: loop header
LB: loop body
LE: loop exit
PB: predicated region body
PF: predicated region fallthrough
CT: control target
= control target key end

     0   :  { %s527_s0 = inlined_call_operand.vmem [shape: f32[2,240], index: 0, kind: input, shape index: {}]   ;;  %s528_s1 = inlined_call_operand.vmem [shape: f32[240,256], index: 1, kind: input, shape index: {}]   ;;  %s529_s2 = inlined_call_operand.vmem [shape: f32[1,256], index: 2, kind: input, shape index: {}]   ;;  %s530_s3 = inlined_call_operand.vmem [shape: f32[2,256], index: 3, kind: input, shape index: {}]   ;;  %s531_s4 = inlined_call_operand.vmem [shape: f32[1,2], index: 4, kind: input, shape index: {}]   ;;  %s532_s5 = inlined_call_operand.hbm [shape: f32[2,2], index: 5, kind: output, shape index: {}]  }
   0x1   :  { %v53_v0 = vld [vmem:[%s528_s1 + $0xf8] sm:$0xff]  ;;  %v51_v1 = vld [vmem:[%s528_s1 + $0xe8] sm:$0xff]  ;;  %v52_v2 = vld [vmem:[%s528_s1 + $0xf0] sm:$0xff] }
   0x2   :  { %136 = vmatpush.msra.mxu2 %v53_v0  ;;  %v81_v3 = vld [vmem:[%s528_s1 + $0x1d8] sm:$0xff]  ;;  %96 = vmatpush.msra.mxu0 %v52_v2  ;;  %v50_v5 = vld [vmem:[%s528_s1 + $0xe0] sm:$0xff]  ;;  %v79_v6 = vld [vmem:[%s528_s1 + $0x1c8] sm:$0xff] }
   0x3   :  { %v49_v4 = vld [vmem:[%s528_s1 + $0xd8] sm:$0xff]  ;;  %158 = vmatpush.msra.mxu3 %v81_v3  ;;  %v48_v7 = vld [vmem:[%s528_s1 + $0xd0] sm:$0xff]  ;;  %v47_v9 = vld [vmem:[%s528_s1 + $0xc8] sm:$0xff] }
   0x4   :  { %137 = vmatpush.msra.mxu2 %v51_v1  ;;  %v77_v8 = vld [vmem:[%s528_s1 + $0x1b8] sm:$0xff]  ;;  %97 = vmatpush.msra.mxu0 %v50_v5  ;;  %v80_v10 = vld [vmem:[%s528_s1 + $0x1d0] sm:$0xff]  ;;  %v46_v11 = vld [vmem:[%s528_s1 + $0xc0] sm:$0xff] }
   0x5   :  { %159 = vmatpush.msra.mxu3 %v79_v6  ;;  %118 = vmatpush.msra.mxu1 %v80_v10  ;;  %v75_v12 = vld [vmem:[%s528_s1 + $0x1a8] sm:$0xff]  ;;  %v78_v13 = vld [vmem:[%s528_s1 + $0x1c0] sm:$0xff]  ;;  %v45_v14 = vld [vmem:[%s528_s1 + $0xb8] sm:$0xff] }
   0x6   :  { %138 = vmatpush.msra.mxu2 %v49_v4  ;;  %98 = vmatpush.msra.mxu0 %v48_v7  ;;  %v44_v15 = vld [vmem:[%s528_s1 + $0xb0] sm:$0xff]  ;;  %v73_v16 = vld [vmem:[%s528_s1 + $0x198] sm:$0xff]  ;;  %v43_v18 = vld [vmem:[%s528_s1 + $0xa8] sm:$0xff] }
   0x7   :  { %160 = vmatpush.msra.mxu3 %v77_v8  ;;  %119 = vmatpush.msra.mxu1 %v78_v13  ;;  %v76_v17 = vld [vmem:[%s528_s1 + $0x1b0] sm:$0xff]  ;;  %v74_v19 = vld [vmem:[%s528_s1 + $0x1a0] sm:$0xff]  ;;  %v71_v21 = vld [vmem:[%s528_s1 + $0x188] sm:$0xff] }
   0x8   :  { %139 = vmatpush.msra.mxu2 %v47_v9  ;;  %99 = vmatpush.msra.mxu0 %v46_v11  ;;  %v42_v20 = vld [vmem:[%s528_s1 + $0xa0] sm:$0xff]  ;;  %v41_v22 = vld [vmem:[%s528_s1 + $0x98] sm:$0xff]  ;;  %v72_v23 = vld [vmem:[%s528_s1 + $0x190] sm:$0xff] }
   0x9   :  { %161 = vmatpush.msra.mxu3 %v75_v12  ;;  %120 = vmatpush.msra.mxu1 %v76_v17  ;;  %v40_v24 = vld [vmem:[%s528_s1 + $0x90] sm:$0xff]  ;;  %v69_v25 = vld [vmem:[%s528_s1 + $0x178] sm:$0xff]  ;;  %v39_v26 = vld [vmem:[%s528_s1 + $0x88] sm:$0xff] }
   0xa   :  { %140 = vmatpush.msra.mxu2 %v45_v14  ;;  %100 = vmatpush.msra.mxu0 %v44_v15  ;;  %v70_v27 = vld [vmem:[%s528_s1 + $0x180] sm:$0xff]  ;;  %v67_v29 = vld [vmem:[%s528_s1 + $0x168] sm:$0xff]  ;;  %v37_v30 = vld [vmem:[%s528_s1 + $0x78] sm:$0xff] }
   0xb   :  { %162 = vmatpush.msra.mxu3 %v73_v16  ;;  %121 = vmatpush.msra.mxu1 %v74_v19  ;;  %v38_v28 = vld [vmem:[%s528_s1 + $0x80] sm:$0xff]  ;;  %v68_v31 = vld [vmem:[%s528_s1 + $0x170] sm:$0xff]  ;;  %v65_v33 = vld [vmem:[%s528_s1 + $0x158] sm:$0xff] }
   0xc   :  { %141 = vmatpush.msra.mxu2 %v43_v18  ;;  %101 = vmatpush.msra.mxu0 %v42_v20  ;;  %v36_v32 = vld [vmem:[%s528_s1 + $0x70] sm:$0xff]  ;;  %v35_v34 = vld [vmem:[%s528_s1 + $0x68] sm:$0xff]  ;;  %v66_v35 = vld [vmem:[%s528_s1 + $0x160] sm:$0xff] }
   0xd   :  { %163 = vmatpush.msra.mxu3 %v71_v21  ;;  %122 = vmatpush.msra.mxu1 %v72_v23  ;;  %v34_v36 = vld [vmem:[%s528_s1 + $0x60] sm:$0xff]  ;;  %v63_v37 = vld [vmem:[%s528_s1 + $0x148] sm:$0xff]  ;;  %v33_v39 = vld [vmem:[%s528_s1 + $0x58] sm:$0xff] }
   0xe   :  { %142 = vmatpush.msra.mxu2 %v41_v22  ;;  %102 = vmatpush.msra.mxu0 %v40_v24  ;;  %v21_v38 = vld [vmem:[%s527_s0] sm:$0xf]  ;;  %v64_v40 = vld [vmem:[%s528_s1 + $0x150] sm:$0xff]  ;;  %v61_v42 = vld [vmem:[%s528_s1 + $0x138] sm:$0xff] }
   0xf   :  { %164 = vmatpush.msra.mxu3 %v69_v25  ;;  %123 = vmatpush.msra.mxu1 %v70_v27  ;;  %89 = vst [vmem:[#allocation1] ss:$4 sm:$0xff] %v21_v38  ;;  %v32_v41 = vld [vmem:[%s528_s1 + $0x50] sm:$0xff]  ;;  %v31_v43 = vld [vmem:[%s528_s1 + $0x48] sm:$0xff]  ;;  %v62_v44 = vld [vmem:[%s528_s1 + $0x140] sm:$0xff] }
  0x10   :  { %143 = vmatpush.msra.mxu2 %v39_v26  ;;  %103 = vmatpush.msra.mxu0 %v38_v28  ;;  %v30_v45 = vld [vmem:[%s528_s1 + $0x40] sm:$0xff]  ;;  %v59_v46 = vld [vmem:[%s528_s1 + $0x128] sm:$0xff] }
  0x11   :  { %165 = vmatpush.msra.mxu3 %v67_v29  ;;  %124 = vmatpush.msra.mxu1 %v68_v31 }
  0x12   :  { %144 = vmatpush.msra.mxu2 %v37_v30  ;;  %104 = vmatpush.msra.mxu0 %v36_v32 }
  0x13   :  { %166 = vmatpush.msra.mxu3 %v65_v33  ;;  %125 = vmatpush.msra.mxu1 %v66_v35 }
  0x14   :  { %145 = vmatpush.msra.mxu2 %v35_v34  ;;  %105 = vmatpush.msra.mxu0 %v34_v36 }
  0x15   :  { %167 = vmatpush.msra.mxu3 %v63_v37  ;;  %126 = vmatpush.msra.mxu1 %v64_v40 }
  0x16   :  { %146 = vmatpush.msra.mxu2 %v33_v39 }
  0x17   :  { %10 = vsyncpa [#allocation3], 0  ;;  %v29_v47 = vld [vmem:[%s528_s1 + $0x38] sm:$0xff]  ;;  %106 = vmatpush.msra.mxu0 %v32_v41  ;;  %168 = vmatpush.msra.mxu3 %v61_v42  ;;  %v60_v48 = vld [vmem:[%s528_s1 + $0x130] sm:$0xff]  ;;  %vm93_vm0 = vcmask 916480   ;;  %vm187_vm1 = vcmask 1041408  }
  0x18   :  { %147 = vmatpush.msra.mxu2 %v31_v43  ;;  %v28_v49 = vld [vmem:[%s528_s1 + $0x30] sm:$0xff]  ;;  %127 = vmatpush.msra.mxu1 %v62_v44  ;;  %v57_v50 = vld [vmem:[%s528_s1 + $0x118] sm:$0xff]  ;;  %v27_v51 = vld [vmem:[%s528_s1 + $0x28] sm:$0xff]  ;;  %s298_s17 = smov 1   ;;  %s250_s21 = sshll.u32 %s532_s5, 4  ;;  %vm239_vm2 = vcmask 7168   ;;  %s251_s21 = int_to_ptr.hbm [resolvable:$true] %s250_s21 }
  0x19   :  { %107 = vmatpush.msra.mxu0 %v30_v45  ;;  %169 = vmatpush.msra.mxu3 %v59_v46  ;;  %v58_v52 = vld [vmem:[%s528_s1 + $0x120] sm:$0xff]  ;;  %v55_v54 = vld [vmem:[%s528_s1 + $0x108] sm:$0xff]  ;;  %v25_v55 = vld [vmem:[%s528_s1 + $0x18] sm:$0xff]  ;;  %vm241_vm3 = vcmask 9216  }
  0x1a   :  { %148 = vmatpush.msra.mxu2 %v29_v47  ;;  %v26_v53 = vld [vmem:[%s528_s1 + $0x20] sm:$0xff]  ;;  %128 = vmatpush.msra.mxu1 %v60_v48  ;;  %v91_v56 = vld.sshfl [vmem:[#allocation1 + $0x8] sm:$0xff pattern:$0x73625140]  ;;  %v24_v57 = vld [vmem:[%s528_s1 + $0x10] sm:$0xff] }
  0x1b   :  { %108 = vmatpush.msra.mxu0 %v28_v49  ;;  %170 = vmatpush.msra.mxu3 %v57_v50  ;;  %v56_v58 = vld [vmem:[%s528_s1 + $0x110] sm:$0xff]  ;;  %v23_v59 = vld [vmem:[%s528_s1 + $0x8] sm:$0xff]  ;;  %v90_v60 = vld.sshfl [vmem:[#allocation1] sm:$0xff pattern:$0x73625140] }
  0x1c   :  { %149 = vmatpush.msra.mxu2 %v27_v51  ;;  %129 = vmatpush.msra.mxu1 %v58_v52  ;;  %v22_v61 = vld [vmem:[%s528_s1] sm:$0xff] }
  0x1d   :  { %109 = vmatpush.msra.mxu0 %v26_v53  ;;  %171 = vmatpush.msra.mxu3 %v55_v54  ;;  %v54_v62 = vld [vmem:[%s528_s1 + $0x100] sm:$0xff] }
  0x1e   :  { %150 = vmatpush.msra.mxu2 %v25_v55  ;;  %260 = vmatmul.msk.f32.vlgmr.msra.gmra.mxu3 %vm93_vm0, %v91_v56  ;;  %v82_v63 = vld [vmem:[%s529_s2] sm:$0x3] }
  0x1f   :  { %110 = vmatpush.msra.mxu0 %v24_v57  ;;  %130 = vmatpush.msra.mxu1 %v56_v58  ;;  %v176_v0 = vld [vmem:[%s530_s3] sm:$0xf]  ;;  %v84_v1 = vperm.slane %v82_v63, 0  ;;  %v85_v6 = vperm.slane %v82_v63, 1  ;;  %s297_s3 = smov 127  }
  0x20   :  { %151 = vmatpush.msra.mxu2 %v23_v59  ;;  %v197_v2 = vperm.slane %v176_v0, 1  ;;  %v198_v8 = vperm.slane %v176_v0, 3  ;;  %v179_v11 = vperm.slane %v176_v0, 0  ;;  %v180_v15 = vperm.slane %v176_v0, 2  ;;  %v264_v29 = vld [vmem:[%s531_s4] ss:$0 sm:$0xff] }
  0x21   :  { %152 = vmatmul.f32.vlgmr.msra.gmra.mxu2 %v90_v60  ;;  %111 = vmatpush.msra.mxu0 %v22_v61  ;;  %s299_s4 = smov [#allocation2]  }
  0x22   :  { %112 = vmatmul.f32.vlgmr.msra.gmra.mxu0 %v90_v60  ;;  %131 = vmatpush.msra.mxu1 %v54_v62  ;;  %v201_v7 = vperm.slane %v197_v2, 1  ;;  %v202_v16 = vperm.slane %v198_v8, 1  ;;  %v183_v18 = vperm.slane %v179_v11, 0  ;;  %v184_v19 = vperm.slane %v180_v15, 0  ;;  %s248_s18 = sshll.u32 %s299_s4, 4  ;;  %s249_s18 = int_to_ptr.vmem [resolvable:$true] %s248_s18 }
  0x23   :  { %259 = vmatmul.msk.f32.vlgmr.msra.gmra.mxu1 %vm93_vm0, %v91_v56 }
  0x9f   :  { %v113_v3 = vpop.f32.mrf.mxu0 }
  0xa0   :  { %v114_v4 = vadd.f32 %v113_v3, %v84_v1  ;;  %v133_v5 = vpop.f32.mrf.mxu1 }
  0xa1   :  { %v173_v12 = vpop.f32.mrf.mxu3 }
  0xa2   :  { %v134_v9 = vadd.f32 %v133_v5, %v114_v4 }
  0xa4   :  { %v153_v10 = vpop.f32.mrf.mxu2  ;;  %v203_v14 = vmul.f32 %v201_v7, %v134_v9  ;;  %v185_v24 = vmul.f32 %v183_v18, %v134_v9 }
  0xa5   :  { %v154_v13 = vadd.f32 %v153_v10, %v85_v6 }
  0xa6   :  { %v205_v21 = vsel %vm187_vm1, %v203_v14, 0.0  ;;  %v188_v26 = vsel %vm187_vm1, %v185_v24, 0.0 }
  0xa7   :  { %v174_v17 = vadd.f32 %v173_v12, %v154_v13 }
  0xa9   :  { %v204_v20 = vmul.f32 %v202_v16, %v174_v17  ;;  %v186_v25 = vmul.f32 %v184_v19, %v174_v17 }
  0xab   :  { %v206_v22 = vsel %vm187_vm1, %v204_v20, 0.0  ;;  %v189_v27 = vsel %vm187_vm1, %v186_v25, 0.0 }
  0xac   :  { %v207_v23 = vadd.f32 %v206_v22, %v205_v21  ;;  %v190_v28 = vadd.f32 %v189_v27, %v188_v26 }
  0xae   :  { %208 = vadd.xlane.f32.xlu0 %v207_v23 }
  0xb6   :  { %191 = vadd.xlane.f32.xlu0 %v190_v28 }
 0x121   :  { %v209_v30 = vpop.xlane.xlu0 %208 }
 0x122   :  { %v210_v31 = vadd.f32 %v264_v29, %v209_v30 }
 0x124   :  { %212 = vrot.lane.b32.xlu1 %v210_v31, %s297_s3 }
 0x129   :  { %v192_v32 = vpop.xlane.xlu0 %191 }
 0x12a   :  { %v196_v33 = vadd.f32 %v264_v29, %v192_v32 }
 0x196   :  { %v213_v34 = vpop.permute.xlu1 %212 }
 0x197   :  { %v215_v35 = vmax.f32 %v196_v33, %v213_v34 }
 0x199   :  { %v216_v36 = vsub.f32 %v196_v33, %v215_v35  ;;  %218 = vrot.lane.b32.xlu1 %v215_v35, %s298_s17 }
 0x19b   :  { %v222_v41 = vmul.f32 1.442695, %v216_v36 }
 0x20b   :  { %v219_v37 = vpop.permute.xlu1 %218 }
 0x20c   :  { %v221_v38 = vsub.f32 %v210_v31, %v219_v37 }
 0x20e   :  { %v224_v39 = vmul.f32 1.442695, %v221_v38 }
 0x210   :  { %265 = vpow2.f32 %v224_v39 }
 0x211   :  { %267 = vpow2.f32 %v222_v41 }
 0x216   :  { %v266_v40 = vpop.eup %265 }
 0x217   :  { %227 = vrot.lane.b32.xlu2 %v266_v40, %s297_s3  ;;  %v268_v42 = vpop.eup %267 }
 0x271   :  { %v228_v43 = vpop.permute.xlu2 %227 }
 0x272   :  { %v230_v44 = vadd.f32 %v268_v42, %v228_v43 }
 0x274   :  { %269 = vlog2.f32 %v230_v44 }
 0x27a   :  { %v270_v45 = vpop.eup %269 }
 0x27b   :  { %v232_v46 = vmul.f32 0.6931472, %v270_v45 }
 0x27d   :  { %235 = vrot.lane.b32.xlu2 %v232_v46, %s298_s17  ;;  %v233_v48 = vsub.f32 %v216_v36, %v232_v46 }
 0x2d7   :  { %v236_v47 = vpop.permute.xlu2 %235 }
 0x2d8   :  { %v238_v49 = vsub.f32 %v221_v38, %v236_v47 }
 0x2da   :  { %v240_v50 = vsel %vm239_vm2, %v233_v48, %v238_v49 }
 0x2db   :  { %242 = vst.msk [vmem:[#allocation2] sm:$0x3] %vm241_vm3, %v240_v50 }
 0x2dc   :  { %253 = dma.vmem_to_hbm [thread:$0]  %s249_s18, 32, %s251_s21, [#allocation3]  }
 0x2dd   :  { %295 = dma.done.wait [#allocation3], 32  }
 0x2de   :  { %296 = vsyncadd [#allocation3], 4294967264 }
 0x2df   :  { %258 = vsyncpa [#allocation3], 1 }

// kernel: kanc_mlp_forward.2
= control target key start
LH: loop header
LB: loop body
LE: loop exit
PB: predicated region body
PF: predicated region fallthrough
CT: control target
= control target key end

     0   :  { %vm77_vm0 = vcmask 1041408   ;;  %vm37_vm1 = vcmask 80896   ;;  %v2444_v33 = vmov 0.0   ;;  %s2438_s0 = inlined_call_operand.vmem [shape: f32[10,128], index: 0, kind: input, shape index: {}]   ;;  %s2439_s1 = inlined_call_operand.vmem [shape: f32[10,128], index: 1, kind: input, shape index: {}]   ;;  %s2440_s2 = inlined_call_operand.vmem [shape: f32[104,10], index: 2, kind: input, shape index: {}]   ;;  %s2441_s3 = inlined_call_operand.vmem [shape: f32[8,10], index: 3, kind: input, shape index: {}]   ;;  %s2442_s4 = inlined_call_operand.vmem [shape: f32[8,104], index: 4, kind: input, shape index: {}]   ;;  %s2443_s5 = inlined_call_operand.vmem [shape: f32[8,128], index: 5, kind: output, shape index: {}]  }
   0x1   :  { %v1329_v0 = vld [vmem:[%s2438_s0 + $0x8] sm:$0x3]  ;;  %v1339_v2 = vld [vmem:[%s2438_s0] sm:$0xff]  ;;  %v34_v7 = vld [vmem:[%s2440_s2 + $0x50] sm:$0xff] }
   0x2   :  { %v1334_v1 = vld [vmem:[%s2439_s1 + $0x8] sm:$0x3]  ;;  %1210 = vmatpush.msk.msra.mxu0 %vm77_vm0, %v1329_v0  ;;  %1274 = vmatpush.msk.msra.mxu2 %vm77_vm0, %v1329_v0  ;;  %v1352_v3 = vld [vmem:[%s2439_s1] sm:$0xff]  ;;  %v26_v8 = vld [vmem:[%s2440_s2 + $0x10] sm:$0xff]  ;;  %v1266_v17 = vmul.f32 -1.442695, %v1329_v0 }
   0x3   :  { %1224 = vmatpush.msk.msra.mxu1 %vm77_vm0, %v1334_v1  ;;  %1276 = vmatpush.msk.msra.mxu3 %vm77_vm0, %v1334_v1  ;;  %v24_v4 = vld [vmem:[%s2440_s2] sm:$0xff]  ;;  %v33_v5 = vld [vmem:[%s2440_s2 + $0x48] sm:$0xff]  ;;  %v35_v9 = vld [vmem:[%s2440_s2 + $0x58] sm:$0xff]  ;;  %v1267_v18 = vmul.f32 -1.442695, %v1334_v1 }
   0x4   :  { %99 = vmatpush.msra.mxu0 %v1339_v2  ;;  %1275 = vmatpush.msra.mxu2 %v1339_v2  ;;  %v25_v6 = vld [vmem:[%s2440_s2 + $0x8] sm:$0xff]  ;;  %v27_v10 = vld [vmem:[%s2440_s2 + $0x18] sm:$0xff]  ;;  %v36_v11 = vld [vmem:[%s2440_s2 + $0x60] sm:$0xff]  ;;  %v1264_v19 = vmul.f32 -1.442695, %v1339_v2  ;;  %1279 = vpow2.f32 %v1266_v17 }
   0x5   :  { %155 = vmatpush.msra.mxu1 %v1352_v3  ;;  %1277 = vmatpush.msra.mxu3 %v1352_v3  ;;  %v28_v12 = vld [vmem:[%s2440_s2 + $0x20] sm:$0xff]  ;;  %v29_v13 = vld [vmem:[%s2440_s2 + $0x28] sm:$0xff]  ;;  %v30_v14 = vld [vmem:[%s2440_s2 + $0x30] sm:$0xff]  ;;  %v1265_v20 = vmul.f32 -1.442695, %v1352_v3  ;;  %1281 = vpow2.f32 %v1267_v18 }
   0x6   :  { %1211 = vmatmul.msk.f32.vlgmr.msra.gmra.mxu0 %vm37_vm1, %v24_v4  ;;  %1220 = vmatmul.msk.f32.vlgmr.msra.gmra.mxu2 %vm37_vm1, %v33_v5  ;;  %v31_v15 = vld [vmem:[%s2440_s2 + $0x38] sm:$0xff]  ;;  %v32_v16 = vld [vmem:[%s2440_s2 + $0x40] sm:$0xff]  ;;  %1283 = vpow2.f32 %v1264_v19 }
   0x7   :  { %1225 = vmatmul.msk.f32.vlgmr.msra.gmra.mxu1 %vm37_vm1, %v24_v4  ;;  %1234 = vmatmul.msk.f32.vlgmr.msra.gmra.mxu3 %vm37_vm1, %v33_v5  ;;  %1285 = vpow2.f32 %v1265_v20 }
   0xa   :  { %v1280_v21 = vpop.eup %1279 }
   0xb   :  { %v1282_v22 = vpop.eup %1281  ;;  %v1427_v25 = vadd.f32 1.0, %v1280_v21 }
   0xc   :  { %v1284_v23 = vpop.eup %1283  ;;  %v1429_v26 = vadd.f32 1.0, %v1282_v22 }
   0xd   :  { %v1286_v24 = vpop.eup %1285  ;;  %v1433_v28 = vadd.f32 1.0, %v1284_v23  ;;  %1287 = vrcp.f32 %v1427_v25 }
   0xe   :  { %1212 = vmatmul.msk.f32.gmra.mxu0 %vm37_vm1, %v25_v6  ;;  %1221 = vmatmul.msk.f32.gmra.mxu2 %vm37_vm1, %v34_v7  ;;  %v1439_v30 = vadd.f32 1.0, %v1286_v24  ;;  %1289 = vrcp.f32 %v1429_v26 }
   0xf   :  { %1226 = vmatmul.msk.f32.gmra.mxu1 %vm37_vm1, %v25_v6  ;;  %1235 = vmatmul.msk.f32.gmra.mxu3 %vm37_vm1, %v34_v7  ;;  %1291 = vrcp.f32 %v1433_v28 }
  0x10   :  { %1293 = vrcp.f32 %v1439_v30 }
  0x13   :  { %v1480_v44 = vpop.eup %1287 }
  0x14   :  { %v1493_v49 = vpop.eup %1289 }
  0x15   :  { %v1506_v54 = vpop.eup %1291 }
  0x16   :  { %1213 = vmatmul.msk.f32.gmra.mxu0 %vm37_vm1, %v26_v8  ;;  %1222 = vmatmul.msk.f32.gmra.mxu2 %vm37_vm1, %v35_v9  ;;  %v1516_v58 = vpop.eup %1293 }
  0x17   :  { %1227 = vmatmul.msk.f32.gmra.mxu1 %vm37_vm1, %v26_v8  ;;  %1236 = vmatmul.msk.f32.gmra.mxu3 %vm37_vm1, %v35_v9 }
  0x1e   :  { %1214 = vmatmul.msk.f32.gmra.mxu0 %vm37_vm1, %v27_v10  ;;  %1223 = vmatmul.msk.f32.gmra.mxu2 %vm37_vm1, %v36_v11 }
  0x1f   :  { %1228 = vmatmul.msk.f32.gmra.mxu1 %vm37_vm1, %v27_v10  ;;  %1237 = vmatmul.msk.f32.gmra.mxu3 %vm37_vm1, %v36_v11 }
  0x26   :  { %1215 = vmatmul.msk.f32.gmra.mxu0 %vm37_vm1, %v28_v12 }
  0x27   :  { %1229 = vmatmul.msk.f32.gmra.mxu1 %vm37_vm1, %v28_v12 }
  0x2e   :  { %1216 = vmatmul.msk.f32.gmra.mxu0 %vm37_vm1, %v29_v13 }
  0x2f   :  { %1230 = vmatmul.msk.f32.gmra.mxu1 %vm37_vm1, %v29_v13 }
  0x36   :  { %1217 = vmatmul.msk.f32.gmra.mxu0 %vm37_vm1, %v30_v14 }
  0x37   :  { %1231 = vmatmul.msk.f32.gmra.mxu1 %vm37_vm1, %v30_v14 }
  0x3e   :  { %1218 = vmatmul.msk.f32.gmra.mxu0 %vm37_vm1, %v31_v15 }
  0x3f   :  { %1232 = vmatmul.msk.f32.gmra.mxu1 %vm37_vm1, %v31_v15 }
  0x46   :  { %1219 = vmatmul.msk.f32.gmra.mxu0 %vm37_vm1, %v32_v16 }
  0x47   :  { %1233 = vmatmul.msk.f32.gmra.mxu1 %vm37_vm1, %v32_v16 }
  0x83   :  { %v1431_v27 = vpop.f32.mrf.mxu0 }
  0x84   :  { %2528 = vst [vmem:[#allocation2_spill] sm:$0xff] %v1431_v27  ;;  %vm196_vm2 = vcmp.ge.f32.partialorder %v1431_v27, 0.0  ;;  %vm222_vm3 = vcmp.lt.f32.partialorder %v1431_v27, 0.4  ;;  %v1437_v29 = vpop.f32.mrf.mxu1  ;;  %v1445_v31 = vmul.f32 2.5, %v1431_v27  ;;  %v1449_v32 = vmul.f32 1.25, %v1431_v27 }
  0x85   :  { %2529 = vst [vmem:[#allocation3_spill] sm:$0xff] %v1437_v29  ;;  %vm197_vm4 = vcmp.ge.f32.partialorder %v1437_v29, 0.0  ;;  %vm223_vm5 = vcmp.lt.f32.partialorder %v1437_v29, 0.4  ;;  %vm248_vm6 = vmand %vm196_vm2, %vm222_vm3  ;;  %v1457_v35 = vmul.f32 2.5, %v1437_v29  ;;  %v1460_v36 = vmul.f32 1.25, %v1437_v29 }
  0x86   :  { %2530 = vst [vmem:[#allocation4_spill] sm:$0xff] %v1445_v31  ;;  %vm249_vm7 = vmand %vm197_vm4, %vm223_vm5  ;;  %v1454_v34 = vsel %vm248_vm6, 1.0, %v2444_v33 }
  0x87   :  { %2531 = vst [vmem:[#allocation5_spill] sm:$0xff] %v1449_v32  ;;  %v1466_v39 = vsel %vm249_vm7, 1.0, %v2444_v33  ;;  %v1484_v45 = vmul.f32 %v1454_v34, %v1445_v31 }
  0x88   :  { %2532 = vst [vmem:[#allocation6_spill] sm:$0xff] %v1454_v34  ;;  %v1497_v50 = vmul.f32 %v1466_v39, %v1457_v35 }
  0x89   :  { %2533 = vst [vmem:[#allocation7_spill] sm:$0xff] %v1457_v35  ;;  %v1462_v37 = vpop.f32.mrf.mxu2 }
  0x8a   :  { %2534 = vst [vmem:[#allocation8_spill] sm:$0xff] %v1460_v36  ;;  %vm214_vm8 = vcmp.ge.f32.partialorder %v1462_v37, 0.0  ;;  %vm240_vm9 = vcmp.lt.f32.partialorder %v1462_v37, 0.4  ;;  %v1470_v40 = vpop.f32.mrf.mxu3  ;;  %v1474_v42 = vmul.f32 2.5, %v1462_v37  ;;  %v1488_v47 = vmul.f32 1.25, %v1462_v37 }
  0x8b   :  { %2535 = vst [vmem:[#allocation9_spill] sm:$0xff] %v1466_v39  ;;  %vm266_vm10 = vmand %vm214_vm8, %vm240_vm9  ;;  %vm215_vm11 = vcmp.ge.f32.partialorder %v1470_v40, 0.0  ;;  %vm241_vm12 = vcmp.lt.f32.partialorder %v1470_v40, 0.4  ;;  %v1478_v43 = vpop.f32.mrf.mxu0  ;;  %v1504_v53 = vmul.f32 2.5, %v1470_v40  ;;  %v1513_v57 = vmul.f32 1.25, %v1470_v40 }
  0x8c   :  { %2536 = vst [vmem:[#allocation10_spill] sm:$0xff] %v1470_v40  ;;  %vm267_vm13 = vmand %vm215_vm11, %vm241_vm12  ;;  %vm198_vm14 = vcmp.ge.f32.partialorder %v1478_v43, 0.0  ;;  %v1491_v48 = vpop.f32.mrf.mxu1  ;;  %v1501_v52 = vsel %vm266_vm10, 1.0, %v2444_v33  ;;  %vm224_vm15 = vcmp.lt.f32.partialorder %v1478_v43, 0.4  ;;  %v1520_v60 = vmul.f32 2.5, %v1478_v43 }
  0x8d   :  { %2537 = vst [vmem:[#allocation11_spill] sm:$0xff] %v1478_v43  ;;  %v1510_v56 = vsel %vm267_vm13, 1.0, %v2444_v33  ;;  %vm250_vm2 = vmand %vm198_vm14, %vm224_vm15  ;;  %vm199_vm3 = vcmp.ge.f32.partialorder %v1491_v48, 0.0  ;;  %vm225_vm4 = vcmp.lt.f32.partialorder %v1491_v48, 0.4  ;;  %v1526_v61 = vmul.f32 %v1501_v52, %v1474_v42 }
  0x8e   :  { %2538 = vst [vmem:[#allocation12_spill] sm:$0xff] %v1484_v45  ;;  %v1531_v4 = vsel %vm250_vm2, 1.0, %v2444_v33  ;;  %vm251_vm5 = vmand %vm199_vm3, %vm225_vm4  ;;  %v1535_v5 = vmul.f32 %v1510_v56, %v1504_v53  ;;  %v1540_v8 = vmul.f32 1.25, %v1478_v43  ;;  %v1546_v11 = vmul.f32 2.5, %v1491_v48 }
  0x8f   :  { %2539 = vst [vmem:[#allocation13_spill] sm:$0xff] %v1488_v47  ;;  %v1549_v12 = vmul.f32 1.25, %v1491_v48  ;;  %v1556_v14 = vmul.f32 %v1531_v4, %v1520_v60  ;;  %v1559_v15 = vsel %vm251_vm5, 1.0, %v2444_v33 }
  0x90   :  { %2540 = vst [vmem:[#allocation14_spill] sm:$0xff] %v1491_v48  ;;  %v1585_v41 = vmul.f32 %v1559_v15, %v1546_v11 }
  0x91   :  { %2541 = vst [vmem:[#allocation15_spill] sm:$0xff] %v1497_v50  ;;  %v1542_v9 = vpop.f32.mrf.mxu2  ;;  %v2563_v50 = vmov 0.0  }
  0x92   :  { %2542 = vst [vmem:[#allocation16_spill] sm:$0xff] %v1504_v53  ;;  %vm216_vm6 = vcmp.ge.f32.partialorder %v1542_v9, 0.0  ;;  %v1552_v13 = vpop.f32.mrf.mxu3  ;;  %vm242_vm7 = vcmp.lt.f32.partialorder %v1542_v9, 0.4  ;;  %v1563_v16 = vmul.f32 2.5, %v1542_v9  ;;  %v1578_v23 = vmul.f32 1.25, %v1542_v9 }
  0x93   :  { %2543 = vst [vmem:[#allocation17_spill] sm:$0xff] %v1513_v57  ;;  %v1565_v17 = vpop.f32.mrf.mxu0  ;;  %vm268_vm8 = vmand %vm216_vm6, %vm242_vm7  ;;  %vm217_vm9 = vcmp.ge.f32.partialorder %v1552_v13, 0.0  ;;  %vm243_vm10 = vcmp.lt.f32.partialorder %v1552_v13, 0.4  ;;  %v1581_v24 = vmul.f32 2.5, %v1552_v13  ;;  %v1599_v18 = vmul.f32 1.25, %v1552_v13 }
  0x94   :  { %2544 = vst [vmem:[#allocation18_spill] sm:$0xff] %v1520_v60  ;;  %v1571_v20 = vpop.f32.mrf.mxu1  ;;  %v1575_v22 = vsel %vm268_vm8, 1.0, %v2444_v33  ;;  %vm269_vm11 = vmand %vm217_vm9, %vm243_vm10  ;;  %vm200_vm12 = vcmp.ge.f32.partialorder %v1565_v17, 0.0  ;;  %vm226_vm13 = vcmp.lt.f32.partialorder %v1565_v17, 0.4  ;;  %v1604_v51 = vmul.f32 2.5, %v1565_v17 }
  0x95   :  { %2545 = vst [vmem:[#allocation19_spill] sm:$0xff] %v1526_v61  ;;  %v1592_v21 = vmul.f32 %v1575_v22, %v1563_v16  ;;  %v1596_v46 = vsel %vm269_vm11, 1.0, %v2444_v33  ;;  %vm201_vm14 = vcmp.ge.f32.partialorder %v1571_v20, 0.0  ;;  %vm252_vm15 = vmand %vm200_vm12, %vm226_vm13  ;;  %vm227_vm2 = vcmp.lt.f32.partialorder %v1571_v20, 0.4 }
  0x96   :  { %2546 = vst [vmem:[#allocation20_spill] sm:$0xff] %v1531_v4  ;;  %v1610_v10 = vmul.f32 %v1596_v46, %v1581_v24  ;;  %v1618_v59 = vsel %vm252_vm15, 1.0, %v2444_v33  ;;  %vm253_vm3 = vmand %vm201_vm14, %vm227_vm2  ;;  %v1621_v62 = vmul.f32 2.5, %v1571_v20  ;;  %v1628_v38 = vmul.f32 1.25, %v1565_v17 }
  0x97   :  { %2547 = vst [vmem:[#allocation21_spill] sm:$0xff] %v1535_v5  ;;  %v1631_v19 = vmul.f32 1.25, %v1571_v20  ;;  %v1637_v33 = vmul.f32 %v1480_v44, %v1427_v25  ;;  %v1641_v29 = vmul.f32 %v1618_v59, %v1604_v51  ;;  %v1645_v63 = vsel %vm253_vm3, 1.0, %v2563_v50 }
  0x98   :  { %2548 = vst [vmem:[#allocation22_spill] sm:$0xff] %v1540_v8  ;;  %vm430_vm13 = vcmask 1046528  }
  0x99   :  { %2549 = vst [vmem:[#allocation23_spill] sm:$0xff] %v1546_v11  ;;  %v1614_v6 = vpop.f32.mrf.mxu2 }
  0x9a   :  { %2550 = vst [vmem:[#allocation24_spill] sm:$0xff] %v1549_v12  ;;  %vm218_vm4 = vcmp.ge.f32.partialorder %v1614_v6, 0.0  ;;  %v1624_v55 = vpop.f32.mrf.mxu3  ;;  %vm244_vm5 = vcmp.lt.f32.partialorder %v1614_v6, 0.4  ;;  %v1651_v32 = vmul.f32 2.5, %v1614_v6  ;;  %v1654_v35 = vmul.f32 1.25, %v1614_v6 }
  0x9b   :  { %2551 = vst [vmem:[#allocation25_spill] sm:$0xff] %v1556_v14  ;;  %v1633_v7 = vpop.f32.mrf.mxu0  ;;  %vm270_vm6 = vmand %vm218_vm4, %vm244_vm5  ;;  %vm219_vm7 = vcmp.ge.f32.partialorder %v1624_v55, 0.0  ;;  %vm245_vm8 = vcmp.lt.f32.partialorder %v1624_v55, 0.4  ;;  %v1666_v12 = vmul.f32 %v1645_v63, %v1621_v62  ;;  %v1670_v43 = vmul.f32 2.5, %v1624_v55 }
  0x9c   :  { %2552 = vst [vmem:[#allocation26_spill] sm:$0xff] %v1559_v15  ;;  %v1648_v27 = vpop.f32.mrf.mxu1  ;;  %v1661_v39 = vsel %vm270_vm6, 1.0, %v2563_v50  ;;  %vm271_vm9 = vmand %vm219_vm7, %vm245_vm8  ;;  %vm202_vm10 = vcmp.ge.f32.partialorder %v1633_v7, 0.0  ;;  %v1673_v8 = vmul.f32 1.25, %v1624_v55  ;;  %vm228_vm11 = vcmp.lt.f32.partialorder %v1633_v7, 0.4 }
  0x9d   :  { %2553 = vst [vmem:[#allocation27_spill] sm:$0xff] %v1565_v17  ;;  %v1677_v48 = vmul.f32 %v1661_v39, %v1651_v32  ;;  %v1681_v31 = vsel %vm271_vm9, 1.0, %v2563_v50  ;;  %vm254_vm12 = vmand %vm202_vm10, %vm228_vm11  ;;  %vm203_vm14 = vcmp.ge.f32.partialorder %v1648_v27, 0.0  ;;  %vm229_vm15 = vcmp.lt.f32.partialorder %v1648_v27, 0.4 }
  0x9e   :  { %2554 = vst [vmem:[#allocation28_spill] sm:$0xff] %v1571_v20  ;;  %v1690_v20 = vmul.f32 1.25, %v1633_v7  ;;  %v1693_v36 = vsel %vm254_vm12, 1.0, %v2563_v50  ;;  %v1698_v34 = vmul.f32 2.5, %v1648_v27  ;;  %v1702_v45 = vmul.f32 %v1681_v31, %v1670_v43  ;;  %vm255_vm2 = vmand %vm203_vm14, %vm229_vm15 }
  0x9f   :  { %2555 = vst [vmem:[#allocation29_spill] sm:$0xff] %v1585_v41  ;;  %v1687_v41 = vmul.f32 2.5, %v1633_v7 }
  0xa0   :  { %2556 = vst [vmem:[#allocation30_spill] sm:$0xff] %v1604_v51 }
  0xa1   :  { %2557 = vst [vmem:[#allocation31_spill] sm:$0xff] %v1618_v59  ;;  %v137_v11 = vpop.f32.mrf.mxu2 }
  0xa2   :  { %2558 = vst [vmem:[#allocation32_spill] sm:$0xff] %v1621_v62  ;;  %v193_v4 = vpop.f32.mrf.mxu3  ;;  %vm220_vm3 = vcmp.ge.f32.partialorder %v137_v11, 0.0  ;;  %vm246_vm4 = vcmp.lt.f32.partialorder %v137_v11, 0.4  ;;  %v350_v15 = vmul.f32 2.5, %v137_v11 }
  0xa3   :  { %2559 = vst [vmem:[#allocation33_spill] sm:$0xff] %v1628_v38  ;;  %v1707_v17 = vpop.f32.mrf.mxu0  ;;  %v1715_v38 = vsel %vm255_vm2, 1.0, %v2563_v50  ;;  %vm272_vm5 = vmand %vm220_vm3, %vm246_vm4  ;;  %vm221_vm6 = vcmp.ge.f32.partialorder %v193_v4, 0.0  ;;  %vm247_vm7 = vcmp.lt.f32.partialorder %v193_v4, 0.4  ;;  %v351_v14 = vmul.f32 2.5, %v193_v4 }
  0xa4   :  { %2560 = vst [vmem:[#allocation34_spill] sm:$0xff] %v1631_v19  ;;  %v1717_v62 = vpop.f32.mrf.mxu1  ;;  %v1727_v19 = vmul.f32 1.25, %v1648_v27  ;;  %v1730_v51 = vsel %vm272_vm5, 1.0, %v2563_v50  ;;  %v402_v59 = vsub.f32 2.0, %v350_v15  ;;  %vm273_vm8 = vmand %vm221_vm6, %vm247_vm7  ;;  %v1744_v60 = vmul.f32 0.8333333, %v193_v4 }
  0xa5   :  { %2561 = vst [vmem:[#allocation35_spill] sm:$0xff] %v1633_v7  ;;  %v585_v7 = vmul.f32 1.25, %v137_v11  ;;  %vm204_vm9 = vcmp.ge.f32.partialorder %v1707_v17, 0.0  ;;  %vm230_vm10 = vcmp.lt.f32.partialorder %v1707_v17, 0.4  ;;  %vm205_vm12 = vcmp.ge.f32.partialorder %v1717_v62, 0.0 }
  0xa6   :  { %2562 = vst [vmem:[#allocation36_spill] sm:$0xff] %v1641_v29  ;;  %v376_v29 = vmul.f32 %v1730_v51, %v350_v15  ;;  %vm256_vm11 = vmand %vm204_vm9, %vm230_vm10  ;;  %vm231_vm14 = vcmp.lt.f32.partialorder %v1717_v62, 0.4  ;;  %v1770_v47 = vmul.f32 1.25, %v1707_v17 }
  0xa7   :  { %2564 = vst [vmem:[#allocation37_spill] sm:$0xff] %v1645_v63  ;;  %v1723_v63 = vmul.f32 %v1715_v38, %v1698_v34  ;;  %v637_v57 = vsub.f32 1.5, %v585_v7  ;;  %vm257_vm15 = vmand %vm205_vm12, %vm231_vm14 }
  0xa8   :  { %2565 = vst [vmem:[#allocation38_spill] sm:$0xff] %v1648_v27  ;;  %v1738_v27 = vsel %vm273_vm8, 1.0, %v2563_v50 }
  0xa9   :  { %2566 = vst [vmem:[#allocation39_spill] sm:$0xff] %v1666_v12  ;;  %v1711_v12 = vmul.f32 %v1693_v36, %v1687_v41  ;;  %v377_v15 = vmul.f32 %v1738_v27, %v351_v14 }
  0xaa   :  { %2567 = vst [vmem:[#allocation40_spill] sm:$0xff] %v1687_v41 }
  0xab   :  { %2568 = vst [vmem:[#allocation41_spill] sm:$0xff] %v1690_v20  ;;  %v2489_v20 = vrot.slane %v1730_v51, 1  ;;  %v1750_v40 = vpop.f32.mrf.mxu0 }
  0xac   :  { %2569 = vst [vmem:[#allocation42_spill] sm:$0xff] %v1693_v36  ;;  %v2492_v36 = vrot.slane %v1738_v27, 1  ;;  %v1759_v5 = vpop.f32.mrf.mxu1  ;;  %vm206_vm2 = vcmp.ge.f32.partialorder %v1750_v40, 0.0  ;;  %vm232_vm3 = vcmp.lt.f32.partialorder %v1750_v40, 0.4 }
  0xad   :  { %2570 = vst [vmem:[#allocation43_spill] sm:$0xff] %v1698_v34  ;;  %v586_v34 = vmul.f32 1.25, %v193_v4  ;;  %v507_v41 = vsel %vm430_vm13, %v2489_v20, 0.0  ;;  %v1756_v4 = vmul.f32 2.5, %v1707_v17  ;;  %vm258_vm4 = vmand %vm206_vm2, %vm232_vm3  ;;  %vm207_vm5 = vcmp.ge.f32.partialorder %v1759_v5, 0.0 }
  0xae   :  { %2571 = vst [vmem:[#allocation44_spill] sm:$0xff] %v1707_v17  ;;  %v508_v20 = vsel %vm430_vm13, %v2492_v36, 0.0  ;;  %v1785_v36 = vmul.f32 2.5, %v1717_v62  ;;  %vm233_vm6 = vcmp.lt.f32.partialorder %v1759_v5, 0.4  ;;  %vm1083_vm2 = vweird.f32 %v1480_v44 }
  0xaf   :  { %2572 = vst [vmem:[#allocation45_spill] sm:$0xff] %v1711_v12  ;;  %v1734_v12 = vmul.f32 0.8333333, %v137_v11  ;;  %v1793_v11 = vmul.f32 1.25, %v1717_v62  ;;  %vm259_vm7 = vmand %vm207_vm5, %vm233_vm6  ;;  %vm1097_vm5 = vweird.f32 %v1429_v26  ;;  %vm1098_vm6 = vweird.f32 %v1493_v49 }
  0xb0   :  { %2573 = vst [vmem:[#allocation46_spill] sm:$0xff] %v1715_v38  ;;  %v533_v38 = vmul.f32 %v507_v41, %v402_v59 }
  0xb1   :  { %2574 = vst [vmem:[#allocation47_spill] sm:$0xff] %v1717_v62  ;;  %v1808_v62 = vsel %vm258_vm4, 1.0, %v2563_v50 }
  0xb2   :  { %2575 = vst [vmem:[#allocation48_spill] sm:$0xff] %v1723_v63  ;;  %v403_v63 = vsub.f32 2.0, %v351_v14  ;;  %v1761_v41 = vadd.f32 %v533_v38, %v376_v29  ;;  %v1764_v14 = vsel %vm256_vm11, 1.0, %v2563_v50  ;;  %v1780_v38 = vsel %vm257_vm15, 1.0, %v2563_v50 }
  0xb3   :  { %2576 = vst [vmem:[#allocation49_spill] sm:$0xff] %v1727_v19  ;;  %v638_v19 = vsub.f32 1.5, %v586_v34  ;;  %v1777_v29 = vmul.f32 %v1764_v14, %v1756_v4  ;;  %v1822_v17 = vmul.f32 %v1780_v38, %v1785_v36  ;;  %vm1082_vm15 = vweird.f32 %v1427_v25 }
  0xb4   :  { %2577 = vst [vmem:[#allocation50_spill] sm:$0xff] %v1750_v40  ;;  %v534_v59 = vmul.f32 %v508_v20, %v403_v63  ;;  %v2497_v53 = vrot.slane %v1761_v41, 1  ;;  %v1797_v63 = vmul.f32 %v585_v7, %v1761_v41  ;;  %v1814_v7 = vmul.f32 1.25, %v1750_v40  ;;  %vm1899_vm4 = vmor %vm1082_vm15, %vm1083_vm2 }
  0xb5   :  { %2578 = vst [vmem:[#allocation51_spill] sm:$0xff] %v1756_v4  ;;  %v1811_v4 = vmul.f32 2.5, %v1750_v40  ;;  %v1831_v40 = vmul.f32 2.5, %v1759_v5  ;;  %vm1068_vm15 = vweird.f32 %v1516_v58 }
  0xb6   :  { %2579 = vst [vmem:[#allocation52_spill] sm:$0xff] %v1759_v5  ;;  %v1773_v61 = vadd.f32 %v534_v59, %v377_v15  ;;  %v741_v15 = vsel %vm430_vm13, %v2497_v53, 0.0 }
  0xb7   :  { %2580 = vst [vmem:[#allocation53_spill] sm:$0xff] %v1764_v14  ;;  %v1818_v14 = vmul.f32 %v741_v15, %v637_v57  ;;  %v1833_v57 = vpop.f32.mrf.mxu1  ;;  %v1851_v15 = vmul.f32 1.25, %v1759_v5 }
  0xb8   :  { %2581 = vst [vmem:[#allocation54_spill] sm:$0xff] %v1770_v47  ;;  %v2502_v59 = vrot.slane %v1773_v61, 1  ;;  %v1800_v20 = vmul.f32 %v586_v34, %v1773_v61  ;;  %v1816_v34 = vpop.f32.mrf.mxu0  ;;  %vm209_vm11 = vcmp.ge.f32.partialorder %v1833_v57, 0.0  ;;  %vm235_vm12 = vcmp.lt.f32.partialorder %v1833_v57, 0.4 }
  0xb9   :  { %2582 = vst [vmem:[#allocation55_spill] sm:$0xff] %v1777_v29  ;;  %vm208_vm8 = vcmp.ge.f32.partialorder %v1816_v34, 0.0  ;;  %vm234_vm9 = vcmp.lt.f32.partialorder %v1816_v34, 0.4  ;;  %vm261_vm14 = vmand %vm209_vm11, %vm235_vm12  ;;  %v1086_v47 = vand.u32 2147483647, %v1427_v25  ;;  %vm1067_vm11 = vweird.f32 %v1439_v30 }
  0xba   :  { %2583 = vst [vmem:[#allocation56_spill] sm:$0xff] %v1780_v38  ;;  %v742_v53 = vsel %vm430_vm13, %v2502_v59, 0.0  ;;  %vm260_vm10 = vmand %vm208_vm8, %vm234_vm9  ;;  %v1848_v59 = vmul.f32 2.5, %v1816_v34  ;;  %v1093_v38 = vmul.f32 %v1493_v49, %v1429_v26  ;;  %vm1052_vm8 = vweird.f32 %v1433_v28 }
  0xbb   :  { %2584 = vst [vmem:[#allocation57_spill] sm:$0xff] %v1785_v36  ;;  %v1826_v29 = vmul.f32 %v742_v53, %v638_v19  ;;  %v1843_v53 = vmul.f32 %v1808_v62, %v1811_v4  ;;  %v1857_v36 = vmul.f32 1.25, %v1816_v34  ;;  %vm1892_vm3 = vcmp.eq.f32.partialorder %v1086_v47, 8.507059e+37  ;;  %vm1976_vm2 = vmor %vm1067_vm11, %vm1068_vm15 }
  0xbc   :  { %2585 = vst [vmem:[#allocation58_spill] sm:$0xff] %v1793_v11  ;;  %v1854_v11 = vsel %vm260_vm10, 1.0, %v2563_v50  ;;  %v1103_v47 = vand.u32 2147483648, %v1429_v26  ;;  %vm1053_vm9 = vweird.f32 %v1506_v54  ;;  %vm1927_vm10 = vmor %vm1097_vm5, %vm1098_vm6 }
  0xbd   :  { %2586 = vst [vmem:[#allocation59_spill] sm:$0xff] %v1808_v62  ;;  %v1869_v5 = vmul.f32 %v1854_v11, %v1848_v59  ;;  %v1088_v62 = vand.u32 2147483648, %v1427_v25  ;;  %v1048_v25 = vmul.f32 %v1506_v54, %v1433_v28 }
  0xbe   :  { %2587 = vst [vmem:[#allocation60_spill] sm:$0xff] %v1811_v4 }
  0xbf   :  { %2588 = vst [vmem:[#allocation61_spill] sm:$0xff] %v1814_v7  ;;  %v1873_v7 = vmul.f32 2.5, %v1833_v57 }
  0xc0   :  { %2589 = vst [vmem:[#allocation62_spill] sm:$0xff] %v1816_v34 }
  0xc1   :  { %2590 = vst [vmem:[#allocation63_spill] sm:$0xff] %v1822_v17  ;;  %v1837_v17 = vsel %vm259_vm7, 1.0, %v2563_v50 }
  0xc2   :  { %2591 = vst [vmem:[#allocation64_spill] sm:$0xff] %v1831_v40  ;;  %v1862_v19 = vmul.f32 %v1837_v17, %v1831_v40  ;;  %v1063_v40 = vmul.f32 %v1516_v58, %v1439_v30 }
  0xc3   :  { %2592 = vst [vmem:[#allocation65_spill] sm:$0xff] %v1833_v57 }
  0xc4   :  { %2593 = vst [vmem:[#allocation66_spill] sm:$0xff] %v1837_v17  ;;  %v1889_v17 = vmul.f32 1.25, %v1833_v57  ;;  %v1101_v57 = vand.u32 2147483647, %v1429_v26  ;;  %v2006_v26 = vpop.f32.mrf.mxu1 }
  0xc5   :  { %2594 = vst [vmem:[#allocation67_spill] sm:$0xff] %v1843_v53  ;;  %v1079_v53 = vsub.f32 1.0, %v1637_v33  ;;  %vm211_vm6 = vcmp.ge.f32.partialorder %v2006_v26, 0.0 }
  0xc6   :  { %2595 = vst [vmem:[#allocation68_spill] sm:$0xff] %v1848_v59  ;;  %vm1910_vm7 = vcmp.eq.f32.partialorder %v1101_v57, 8.507059e+37 }
  0xc7   :  { %2596 = vst [vmem:[#allocation69_spill] sm:$0xff] %v1851_v15  ;;  %v1080_v33 = vmul.f32 %v1480_v44, %v1079_v53 }
  0xc8   :  { %2597 = vst [vmem:[#allocation70_spill] sm:$0xff] %v1854_v11  ;;  %v1058_v11 = vand.u32 2147483648, %v1433_v28 }
  0xc9   :  { %2598 = vst [vmem:[#allocation71_spill] sm:$0xff] %v1857_v36  ;;  %v1081_v53 = vadd.f32 %v1480_v44, %v1080_v33  ;;  %v1094_v36 = vsub.f32 1.0, %v1093_v38  ;;  %v1056_v38 = vand.u32 2147483647, %v1433_v28  ;;  %v1073_v28 = vand.u32 2147483648, %v1439_v30 }
  0xca   :  { %2599 = vst [vmem:[#allocation72_spill] sm:$0xff] %v1862_v19  ;;  %v1877_v19 = vsel %vm261_vm14, 1.0, %v2563_v50  ;;  %vm1944_vm14 = vmor %vm1052_vm8, %vm1053_vm9 }
  0xcb   :  { %2600 = vst [vmem:[#allocation73_spill] sm:$0xff] %v1869_v5  ;;  %v1886_v15 = vmul.f32 %v1877_v19, %v1873_v7  ;;  %v1104_v5 = vor.u32 1.1754944e-38, %v1103_v47  ;;  %v1085_v59 = vsel %vm1899_vm4, %v1480_v44, %v1081_v53  ;;  %v1095_v33 = vmul.f32 %v1493_v49, %v1094_v36 }
  0xcc   :  { %vm1938_vm12 = vcmp.eq.f32.partialorder %v1056_v38, 8.507059e+37  ;;  %v1064_v53 = vsub.f32 1.0, %v1063_v40  ;;  %v1966_v40 = vadd.f32 %v1826_v29, %v1800_v20  ;;  %v1074_v29 = vor.u32 1.1754944e-38, %v1073_v28 }
  0xcd   :  { %2601 = vst [vmem:[#allocation74_spill] sm:$0xff] %v1886_v15  ;;  %v1089_v15 = vor.u32 1.1754944e-38, %v1088_v62  ;;  %v1049_v62 = vsub.f32 1.0, %v1048_v25  ;;  %v1096_v44 = vadd.f32 %v1493_v49, %v1095_v33 }
  0xcf   :  { %v1090_v57 = vsel %vm1892_vm3, %v1089_v15, %v1085_v59  ;;  %v1050_v4 = vmul.f32 %v1506_v54, %v1049_v62  ;;  %v1059_v15 = vor.u32 1.1754944e-38, %v1058_v11  ;;  %v1100_v25 = vsel %vm1927_vm10, %v1493_v49, %v1096_v44  ;;  %v1968_v49 = vpop.f32.mrf.mxu0 }
  0xd0   :  { %v1109_v36 = vmul.f32 %v1090_v57, %v1329_v0  ;;  %v1071_v0 = vand.u32 2147483647, %v1439_v30  ;;  %v1958_v62 = vadd.f32 %v1818_v14, %v1797_v63  ;;  %v1105_v38 = vsel %vm1910_vm7, %v1104_v5, %v1100_v25 }
  0xd1   :  { %v1051_v33 = vadd.f32 %v1506_v54, %v1050_v4  ;;  %v1065_v57 = vmul.f32 %v1516_v58, %v1064_v53  ;;  %v1110_v47 = vmul.f32 %v1105_v38, %v1334_v1  ;;  %vm210_vm4 = vcmp.ge.f32.partialorder %v1968_v49, 0.0 }
  0xd2   :  { %1268 = vmatpush.msk.msrb.mxu2 %vm77_vm0, %v1109_v36  ;;  %vm1980_vm3 = vcmp.eq.f32.partialorder %v1071_v0, 8.507059e+37  ;;  %v845_v34 = vmul.f32 %v1734_v12, %v1958_v62  ;;  %v947_v36 = vrot.slane %v1966_v40, 1  ;;  %vm236_vm5 = vcmp.lt.f32.partialorder %v1968_v49, 0.4 }
  0xd3   :  { %v1055_v14 = vsel %vm1944_vm14, %v1506_v54, %v1051_v33  ;;  %v1066_v1 = vadd.f32 %v1516_v58, %v1065_v57  ;;  %v945_v54 = vrot.slane %v1958_v62, 1  ;;  %1270 = vmatpush.msk.msrb.mxu3 %vm77_vm0, %v1110_v47  ;;  %v846_v59 = vmul.f32 %v1744_v60, %v1966_v40  ;;  %vm262_vm0 = vmand %vm210_vm4, %vm236_vm5  ;;  %v2649_v40 = vld [vmem:[#allocation17_spill] sm:$0xff] }
  0xd4   :  { %v1060_v20 = vsel %vm1938_vm12, %v1059_v15, %v1055_v14  ;;  %v2618_v53 = vsub.f32 1.3333334, %v1734_v12  ;;  %v976_v0 = vsel %vm430_vm13, %v947_v36, 0.0  ;;  %v2016_v25 = vsel %vm262_vm0, 1.0, %v2563_v50 }
  0xd5   :  { %v1107_v30 = vmul.f32 %v1060_v20, %v1339_v2  ;;  %v1070_v44 = vsel %vm1976_vm2, %v1516_v58, %v1066_v1  ;;  %v975_v4 = vsel %vm430_vm13, %v945_v54, 0.0  ;;  %v2004_v2 = vmul.f32 2.5, %v1968_v49 }
  0xd6   :  { %v1075_v15 = vsel %vm1980_vm3, %v1074_v29, %v1070_v44  ;;  %v1001_v58 = vmul.f32 %v975_v4, %v2618_v53  ;;  %v455_v33 = vrot.slane %v1877_v19, 1  ;;  %v2619_v38 = vsub.f32 1.3333334, %v1744_v60 }
  0xd7   :  { %1135 = vmatpush.msrb.mxu2 %v1107_v30  ;;  %v1108_v28 = vmul.f32 %v1075_v15, %v1352_v3  ;;  %v2023_v47 = vmul.f32 1.25, %v1968_v49  ;;  %v2028_v63 = vmul.f32 %v2016_v25, %v2004_v2  ;;  %vm237_vm7 = vcmp.lt.f32.partialorder %v2006_v26, 0.4 }
  0xd8   :  { %v1002_v57 = vmul.f32 %v976_v0, %v2619_v38  ;;  %v1027_v14 = vadd.f32 %v1001_v58, %v845_v34  ;;  %v2033_v3 = vmul.f32 2.5, %v2006_v26  ;;  %v2036_v60 = vmul.f32 1.25, %v2006_v26  ;;  %vm263_vm8 = vmand %vm211_vm6, %vm237_vm7 }
  0xd9   :  { %1155 = vmatpush.msrb.mxu3 %v1108_v28  ;;  %v392_v29 = vsub.f32 2.0, %v2004_v2  ;;  %v2620_v20 = vrot.slane %v1730_v51, 1  ;;  %v2621_v1 = vrot.slane %v1661_v39, 1  ;;  %v817_v30 = vmul.f32 0.8333333, %v1614_v6 }
  0xda   :  { %v1028_v5 = vadd.f32 %v1002_v57, %v846_v59  ;;  %1167 = vmatpush.msra.mxu2 %v1027_v14  ;;  %v2622_v44 = vrot.slane %v1738_v27, 1  ;;  %v2623_v4 = vrot.slane %v1681_v31, 1  ;;  %v457_v15 = vrot.slane %v2016_v25, 1 }
  0xdb   :  { %v478_v34 = vsel %vm430_vm13, %v2621_v1, %v2620_v20  ;;  %v627_v53 = vsub.f32 1.5, %v2023_v47  ;;  %v2624_v58 = vsub.f32 2.0, %v1651_v32  ;;  %v818_v0 = vmul.f32 0.8333333, %v1624_v55 }
  0xdc   :  { %v480_v59 = vsel %vm430_vm13, %v2623_v4, %v2622_v44  ;;  %1187 = vmatpush.msra.mxu3 %v1028_v5  ;;  %v2056_v28 = vsel %vm263_vm8, 1.0, %v2563_v50  ;;  %v393_v6 = vsub.f32 2.0, %v2033_v3  ;;  %v628_v27 = vsub.f32 1.5, %v2036_v60 }
  0xdd   :  { %v531_v51 = vmul.f32 %v478_v34, %v2624_v58  ;;  %v2625_v38 = vsub.f32 2.0, %v1670_v43  ;;  %v869_v5 = vsub.f32 1.3333334, %v817_v30  ;;  %v2626_v20 = vmov %v2621_v1 }
  0xde   :  { %v2627_v32 = vrot.slane %v1575_v22, 1  ;;  %v815_v55 = vmul.f32 0.8333333, %v1542_v9  ;;  %v2628_v44 = vsub.f32 2.0, %v1563_v16  ;;  %v2629_v58 = vrot.slane %v1681_v31, 1 }
  0xdf   :  { %v532_v57 = vmul.f32 %v480_v59, %v2625_v38  ;;  %v557_v14 = vadd.f32 %v531_v51, %v1677_v48  ;;  %v2630_v43 = vrot.slane %v1596_v46, 1  ;;  %v816_v59 = vmul.f32 0.8333333, %v1552_v13 }
  0xe0   :  { %v474_v1 = vsel %vm430_vm13, %v2627_v32, %v2626_v20  ;;  %v870_v38 = vsub.f32 1.3333334, %v818_v0  ;;  %v2631_v20 = vsub.f32 2.0, %v1581_v24  ;;  %v867_v32 = vsub.f32 1.3333334, %v815_v55 }
  0xe1   :  { %v558_v34 = vadd.f32 %v532_v57, %v1702_v45  ;;  %v529_v4 = vmul.f32 %v474_v1, %v2628_v44  ;;  %v476_v48 = vsel %vm430_vm13, %v2630_v43, %v2629_v58  ;;  %v609_v39 = vmul.f32 %v1654_v35, %v557_v14 }
  0xe2   :  { %v707_v51 = vrot.slane %v557_v14, 1  ;;  %v530_v9 = vmul.f32 %v476_v48, %v2631_v20  ;;  %v2632_v31 = vrot.slane %v1761_v41, 1  ;;  %v868_v13 = vsub.f32 1.3333334, %v816_v59 }
  0xe3   :  { %v610_v45 = vmul.f32 %v1673_v8, %v558_v34  ;;  %v709_v57 = vrot.slane %v558_v34, 1  ;;  %v555_v16 = vadd.f32 %v529_v4, %v1592_v21  ;;  %v2633_v58 = vrot.slane %v1575_v22, 1 }
  0xe4   :  { %v712_v1 = vsel %vm430_vm13, %v707_v51, %v2632_v31  ;;  %v556_v44 = vadd.f32 %v530_v9, %v1610_v10  ;;  %v2634_v14 = vrot.slane %v1501_v52, 1  ;;  %v2635_v43 = vsub.f32 1.5, %v1654_v35 }
  0xe5   :  { %v2636_v34 = vrot.slane %v1773_v61, 1  ;;  %v703_v4 = vrot.slane %v555_v16, 1  ;;  %v2098_v41 = vmul.f32 0.8333333, %v1462_v37  ;;  %v2637_v10 = vsub.f32 1.5, %v1673_v8 }
  0xe6   :  { %v470_v24 = vsel %vm430_vm13, %v2634_v14, %v2633_v58  ;;  %v765_v48 = vmul.f32 %v712_v1, %v2635_v43  ;;  %v607_v22 = vmul.f32 %v1578_v23, %v555_v16  ;;  %v705_v9 = vrot.slane %v556_v44, 1 }
  0xe7   :  { %v714_v21 = vsel %vm430_vm13, %v709_v57, %v2636_v34  ;;  %v2638_v31 = vsub.f32 2.0, %v1474_v42  ;;  %v708_v35 = vsel %vm430_vm13, %v703_v4, %v707_v51  ;;  %v608_v61 = vmul.f32 %v1599_v18, %v556_v44 }
  0xe8   :  { %v766_v20 = vmul.f32 %v714_v21, %v2637_v10  ;;  %v791_v14 = vadd.f32 %v765_v48, %v609_v39  ;;  %v2639_v1 = vrot.slane %v1596_v46, 1  ;;  %v2640_v43 = vrot.slane %v1510_v56, 1  ;;  %v2642_v10 = vld [vmem:[#allocation19_spill] sm:$0xff]  ;;  %v2644_v48 = vld [vmem:[#allocation16_spill] sm:$0xff] }
  0xe9   :  { %v527_v58 = vmul.f32 %v470_v24, %v2638_v31  ;;  %v2641_v8 = vsub.f32 1.5, %v1578_v23  ;;  %v710_v16 = vsel %vm430_vm13, %v705_v9, %v709_v57  ;;  %v2643_v51 = vsub.f32 1.5, %v1599_v18 }
  0xea   :  { %v472_v37 = vsel %vm430_vm13, %v2640_v43, %v2639_v1  ;;  %v792_v34 = vadd.f32 %v766_v20, %v610_v45  ;;  %v843_v39 = vmul.f32 %v817_v30, %v791_v14  ;;  %v941_v24 = vrot.slane %v791_v14, 1  ;;  %v2646_v45 = vld [vmem:[#allocation13_spill] sm:$0xff] }
  0xeb   :  { %v763_v21 = vmul.f32 %v708_v35, %v2641_v8  ;;  %v2116_v42 = vadd.f32 %v527_v58, %v2642_v10  ;;  %v764_v44 = vmul.f32 %v710_v16, %v2643_v51  ;;  %v2645_v46 = vsub.f32 2.0, %v2644_v48  ;;  %v2647_v58 = vld [vmem:[#allocation21_spill] sm:$0xff] }
  0xec   :  { %v844_v12 = vmul.f32 %v818_v0, %v792_v34  ;;  %v943_v11 = vrot.slane %v792_v34, 1  ;;  %v946_v57 = vsel %vm430_vm13, %v941_v24, %v945_v54  ;;  %v125_v54 = vpop.f32.mrf.mxu0 }
  0xed   :  { %v528_v31 = vmul.f32 %v472_v37, %v2645_v46  ;;  %v789_v1 = vadd.f32 %v763_v21, %v607_v22  ;;  %v605_v23 = vmul.f32 %v2646_v45, %v2116_v42  ;;  %v790_v20 = vadd.f32 %v764_v44, %v608_v61 }
  0xee   :  { %v699_v30 = vrot.slane %v2116_v42, 1  ;;  %v999_v18 = vmul.f32 %v946_v57, %v869_v5  ;;  %v948_v0 = vsel %vm430_vm13, %v943_v11, %v947_v36  ;;  %v2648_v21 = vsub.f32 1.5, %v2646_v45  ;;  %v2654_v42 = vld [vmem:[#allocation70_spill] sm:$0xff] }
  0xef   :  { %v2129_v14 = vadd.f32 %v528_v31, %v2647_v58  ;;  %v841_v35 = vmul.f32 %v815_v55, %v789_v1  ;;  %v937_v22 = vrot.slane %v789_v1, 1  ;;  %v1000_v43 = vmul.f32 %v948_v0, %v870_v38  ;;  %v181_v31 = vpop.f32.mrf.mxu1 }
  0xf0   :  { %v842_v37 = vmul.f32 %v816_v59, %v790_v20  ;;  %v939_v34 = vrot.slane %v790_v20, 1  ;;  %v704_v62 = vsel %vm430_vm13, %v699_v30, %v703_v4  ;;  %v1025_v61 = vadd.f32 %v999_v18, %v843_v39  ;;  %v2650_v4 = vld [vmem:[#allocation10_spill] sm:$0xff] }
  0xf1   :  { %v942_v8 = vsel %vm430_vm13, %v937_v22, %v941_v24  ;;  %v761_v5 = vmul.f32 %v704_v62, %v2648_v21  ;;  %v606_v16 = vmul.f32 %v2649_v40, %v2129_v14  ;;  %v1026_v36 = vadd.f32 %v1000_v43, %v844_v12 }
  0xf2   :  { %v997_v55 = vmul.f32 %v942_v8, %v867_v32  ;;  %v944_v38 = vsel %vm430_vm13, %v939_v34, %v943_v11  ;;  %v701_v59 = vrot.slane %v2129_v14, 1  ;;  %1168 = vmatpush.msra.mxu2 %v1025_v61  ;;  %v814_v39 = vmul.f32 0.8333333, %v2650_v4 }
  0xf3   :  { %v998_v10 = vmul.f32 %v944_v38, %v868_v13  ;;  %v2144_v51 = vadd.f32 %v761_v5, %v605_v23  ;;  %vm212_vm9 = vcmp.ge.f32.partialorder %v125_v54, 0.0  ;;  %1188 = vmatpush.msra.mxu3 %v1026_v36  ;;  %vm238_vm10 = vcmp.lt.f32.partialorder %v125_v54, 0.4 }
  0xf4   :  { %v1023_v24 = vadd.f32 %v997_v55, %v841_v35  ;;  %v706_v44 = vsel %vm430_vm13, %v701_v59, %v705_v9  ;;  %v342_v12 = vmul.f32 2.5, %v125_v54  ;;  %v367_v11 = vmul.f32 %v2056_v28, %v2033_v3  ;;  %vm264_vm11 = vmand %vm212_vm9, %vm238_vm10 }
  0xf5   :  { %v1024_v32 = vadd.f32 %v998_v10, %v842_v37  ;;  %v933_v48 = vrot.slane %v2144_v51, 1  ;;  %v2651_v13 = vsub.f32 1.5, %v2649_v40  ;;  %v459_v1 = vrot.slane %v2056_v28, 1 }
  0xf6   :  { %1169 = vmatpush.msra.mxu2 %v1023_v24  ;;  %v839_v45 = vmul.f32 %v2098_v41, %v2144_v51  ;;  %v865_v9 = vsub.f32 1.3333334, %v2098_v41  ;;  %v1254_v23 = vsel %vm264_vm11, 1.0, %v2563_v50  ;;  %v577_v18 = vmul.f32 1.25, %v125_v54 }
  0xf7   :  { %v762_v46 = vmul.f32 %v706_v44, %v2651_v13  ;;  %1189 = vmatpush.msra.mxu3 %v1024_v32  ;;  %v938_v57 = vsel %vm430_vm13, %v933_v48, %v937_v22  ;;  %v461_v58 = vrot.slane %v1254_v23, 1  ;;  %v866_v35 = vsub.f32 1.3333334, %v814_v39 }
  0xf8   :  { %v995_v0 = vmul.f32 %v938_v57, %v865_v9  ;;  %v394_v43 = vsub.f32 2.0, %v342_v12  ;;  %vm213_vm12 = vcmp.ge.f32.partialorder %v181_v31, 0.0  ;;  %v2652_v62 = vrot.slane %v1501_v52, 1 }
  0xf9   :  { %v2163_v20 = vadd.f32 %v762_v46, %v606_v16  ;;  %v462_v41 = vsel %vm430_vm13, %v457_v15, %v461_v58  ;;  %v2172_v8 = vmul.f32 0.8333333, %v125_v54  ;;  %v368_v21 = vmul.f32 %v1254_v23, %v342_v12 }
  0xfa   :  { %v466_v61 = vsel %vm430_vm13, %v461_v58, %v2652_v62  ;;  %v1021_v22 = vadd.f32 %v995_v0, %v839_v45  ;;  %vm239_vm14 = vcmp.lt.f32.partialorder %v181_v31, 0.4  ;;  %v629_v36 = vsub.f32 1.5, %v577_v18 }
  0xfb   :  { %v935_v37 = vrot.slane %v2163_v20, 1  ;;  %v525_v5 = vmul.f32 %v466_v61, %v394_v43  ;;  %v840_v40 = vmul.f32 %v814_v39, %v2163_v20  ;;  %vm265_vm15 = vmand %vm213_vm12, %vm239_vm14  ;;  %v343_v55 = vmul.f32 2.5, %v181_v31 }
  0xfc   :  { %1170 = vmatpush.msra.mxu2 %v1021_v22  ;;  %v1255_v10 = vsel %vm265_vm15, 1.0, %v2563_v50  ;;  %v523_v54 = vmul.f32 %v462_v41, %v392_v29  ;;  %v863_v4 = vsub.f32 1.3333334, %v2172_v8  ;;  %v578_v44 = vmul.f32 1.25, %v181_v31 }
  0xfd   :  { %v940_v16 = vsel %vm430_vm13, %v935_v37, %v939_v34  ;;  %v551_v52 = vadd.f32 %v525_v5, %v368_v21  ;;  %v463_v24 = vrot.slane %v1255_v10, 1  ;;  %v2182_v39 = vmul.f32 0.8333333, %v181_v31 }
  0xfe   :  { %v996_v38 = vmul.f32 %v940_v16, %v866_v35  ;;  %v369_v34 = vmul.f32 %v1255_v10, %v343_v55  ;;  %v395_v13 = vsub.f32 2.0, %v343_v55  ;;  %v2653_v45 = vrot.slane %v1510_v56, 1  ;;  %v2658_v16 = vld [vmem:[#allocation73_spill] sm:$0xff] }
  0xff   :  { %v695_v32 = vrot.slane %v551_v52, 1  ;;  %v464_v46 = vsel %vm430_vm13, %v459_v1, %v463_v24  ;;  %v549_v2 = vadd.f32 %v523_v54, %v2028_v63  ;;  %v809_v29 = vmul.f32 0.8333333, %v1968_v49 }
 0x100   :  { %v1022_v12 = vadd.f32 %v996_v38, %v840_v40  ;;  %v468_v50 = vsel %vm430_vm13, %v463_v24, %v2653_v45  ;;  %v524_v23 = vmul.f32 %v464_v46, %v393_v6  ;;  %v2198_v57 = vmul.f32 0.8333333, %v2006_v26 }
 0x101   :  { %v700_v31 = vsel %vm430_vm13, %v695_v32, %v699_v30  ;;  %v526_v9 = vmul.f32 %v468_v50, %v395_v13  ;;  %v603_v58 = vmul.f32 %v577_v18, %v551_v52  ;;  %v630_v0 = vsub.f32 1.5, %v578_v44  ;;  %v2656_v18 = vld [vmem:[#allocation68_spill] sm:$0xff] }
 0x102   :  { %1190 = vmatpush.msra.mxu3 %v1022_v12  ;;  %v759_v56 = vmul.f32 %v700_v31, %v629_v36  ;;  %v691_v35 = vrot.slane %v549_v2, 1  ;;  %v864_v63 = vsub.f32 1.3333334, %v2182_v39  ;;  %v2201_v49 = vadd.f32 %v524_v23, %v367_v11  ;;  %v2659_v36 = vld [vmem:[#allocation62_spill] sm:$0xff] }
 0x103   :  { %v552_v43 = vadd.f32 %v526_v9, %v369_v34  ;;  %v2655_v30 = vrot.slane %v2654_v42, 1  ;;  %v601_v6 = vmul.f32 %v2023_v47, %v549_v2  ;;  %v2657_v62 = vsub.f32 2.0, %v2656_v18 }
 0x104   :  { %v785_v3 = vadd.f32 %v759_v56, %v603_v58  ;;  %v696_v26 = vsel %vm430_vm13, %v691_v35, %v695_v32  ;;  %v861_v11 = vsub.f32 1.3333334, %v809_v29  ;;  %v862_v5 = vsub.f32 1.3333334, %v2198_v57  ;;  %v2664_v58 = vld [vmem:[#allocation71_spill] sm:$0xff] }
 0x105   :  { %v458_v41 = vsel %vm430_vm13, %v2655_v30, %v457_v15  ;;  %v697_v22 = vrot.slane %v552_v43, 1  ;;  %v757_v21 = vmul.f32 %v696_v26, %v627_v53  ;;  %v693_v40 = vrot.slane %v2201_v49, 1 }
 0x106   :  { %v521_v61 = vmul.f32 %v458_v41, %v2657_v62  ;;  %v929_v25 = vrot.slane %v785_v3, 1  ;;  %v807_v55 = vmul.f32 0.8333333, %v2659_v36  ;;  %v604_v38 = vmul.f32 %v578_v44, %v552_v43 }
 0x107   :  { %v702_v52 = vsel %vm430_vm13, %v697_v22, %v701_v59  ;;  %v783_v10 = vadd.f32 %v757_v21, %v601_v6  ;;  %v460_v47 = vsel %vm430_vm13, %v455_v33, %v459_v1  ;;  %v602_v24 = vmul.f32 %v2036_v60, %v2201_v49  ;;  %v1030_v60 = vld [vmem:[%s2441_s3] sm:$0xff] }
 0x108   :  { %v2217_v15 = vadd.f32 %v521_v61, %v2658_v16  ;;  %v760_v53 = vmul.f32 %v702_v52, %v630_v0  ;;  %v934_v54 = vsel %vm430_vm13, %v929_v25, %v933_v48  ;;  %v698_v44 = vsel %vm430_vm13, %v693_v40, %v697_v22  ;;  %1269 = vmatmul.msk.f32.vlgmr.msrb.gmra.mxu2 %vm37_vm1, %v1030_v60  ;;  %v2666_v49 = vld [vmem:[#allocation74_spill] sm:$0xff] }
 0x109   :  { %v837_v14 = vmul.f32 %v2172_v8, %v785_v3  ;;  %v993_v59 = vmul.f32 %v934_v54, %v863_v4  ;;  %v925_v12 = vrot.slane %v783_v10, 1  ;;  %v758_v28 = vmul.f32 %v698_v44, %v628_v27  ;;  %v2662_v8 = vld [vmem:[#allocation59_spill] sm:$0xff]  ;;  %1271 = vmatmul.msk.f32.vlgmr.msrb.gmra.mxu3 %vm37_vm1, %v1030_v60  ;;  %v2668_v3 = vld [vmem:[#allocation60_spill] sm:$0xff]  ;;  %v2685_v60 = vld [vmem:[#allocation69_spill] sm:$0xff] }
 0x10a   :  { %v786_v32 = vadd.f32 %v760_v53, %v604_v38  ;;  %v687_v1 = vrot.slane %v2217_v15, 1  ;;  %v859_v34 = vsub.f32 1.3333334, %v807_v55  ;;  %v2660_v51 = vsub.f32 2.0, %v1873_v7  ;;  %v2671_v38 = vld [vmem:[#allocation66_spill] sm:$0xff] }
 0x10b   :  { %v1019_v48 = vadd.f32 %v993_v59, %v837_v14  ;;  %v930_v46 = vsel %vm430_vm13, %v925_v12, %v929_v25  ;;  %v2241_v45 = vadd.f32 %v758_v28, %v602_v24  ;;  %v2661_v50 = vmov %v2655_v30  ;;  %v2667_v30 = vld [vmem:[#allocation65_spill] sm:$0xff]  ;;  %v2670_v25 = vld [vmem:[#allocation67_spill] sm:$0xff]  ;;  %v2673_v53 = vld [vmem:[#allocation50_spill] sm:$0xff] }
 0x10c   :  { %v522_v13 = vmul.f32 %v460_v47, %v2660_v51  ;;  %v2663_v4 = vrot.slane %v2662_v8, 1  ;;  %v931_v27 = vrot.slane %v786_v32, 1  ;;  %v835_v31 = vmul.f32 %v809_v29, %v783_v10  ;;  %v2675_v14 = vld [vmem:[#allocation64_spill] sm:$0xff] }
 0x10d   :  { %v991_v9 = vmul.f32 %v930_v46, %v861_v11  ;;  %v692_v7 = vsel %vm430_vm13, %v687_v1, %v691_v35  ;;  %1171 = vmatpush.msra.mxu2 %v1019_v48  ;;  %v927_v23 = vrot.slane %v2241_v45, 1  ;;  %v599_v56 = vmul.f32 %v2664_v58, %v2217_v15 }
 0x10e   :  { %v454_v2 = vsel %vm430_vm13, %v2663_v4, %v2661_v50  ;;  %v2665_v0 = vsub.f32 1.5, %v2664_v58  ;;  %v548_v42 = vadd.f32 %v522_v13, %v2666_v49  ;;  %v936_v29 = vsel %vm430_vm13, %v931_v27, %v935_v37  ;;  %v2689_v49 = vld [vmem:[#allocation52_spill] sm:$0xff] }
 0x10f   :  { %v1017_v35 = vadd.f32 %v991_v9, %v835_v31  ;;  %v808_v41 = vmul.f32 0.8333333, %v2667_v30  ;;  %v2669_v6 = vsub.f32 2.0, %v2668_v3  ;;  %v838_v18 = vmul.f32 %v2182_v39, %v786_v32  ;;  %v2677_v32 = vld [vmem:[#allocation61_spill] sm:$0xff]  ;;  %v2687_v9 = vld [vmem:[#allocation56_spill] sm:$0xff] }
 0x110   :  { %v755_v43 = vmul.f32 %v692_v7, %v2665_v0  ;;  %v994_v62 = vmul.f32 %v936_v29, %v864_v63  ;;  %v932_v61 = vsel %vm430_vm13, %v927_v23, %v931_v27  ;;  %v836_v21 = vmul.f32 %v2198_v57, %v2241_v45  ;;  %v2682_v45 = vld [vmem:[#allocation72_spill] sm:$0xff] }
 0x111   :  { %v519_v26 = vmul.f32 %v454_v2, %v2669_v6  ;;  %1172 = vmatpush.msra.mxu2 %v1017_v35  ;;  %v992_v11 = vmul.f32 %v932_v61, %v862_v5  ;;  %v689_v20 = vrot.slane %v548_v42, 1  ;;  %v600_v36 = vmul.f32 %v1889_v17, %v548_v42  ;;  %v2690_v35 = vld [vmem:[#allocation55_spill] sm:$0xff]  ;;  %v2691_v3 = vld [vmem:[#allocation44_spill] sm:$0xff] }
 0x112   :  { %v781_v22 = vadd.f32 %v755_v43, %v599_v56  ;;  %v1020_v16 = vadd.f32 %v994_v62, %v838_v18  ;;  %v2672_v39 = vrot.slane %v2671_v38, 1  ;;  %v805_v57 = vmul.f32 0.8333333, %v2673_v53 }
 0x113   :  { %v545_v37 = vadd.f32 %v519_v26, %v2670_v25  ;;  %v694_v10 = vsel %vm430_vm13, %v689_v20, %v693_v40  ;;  %v1018_v5 = vadd.f32 %v992_v11, %v836_v21  ;;  %v2674_v24 = vsub.f32 1.5, %v1889_v17  ;;  %v2692_v26 = vld [vmem:[#allocation57_spill] sm:$0xff] }
 0x114   :  { %v921_v15 = vrot.slane %v781_v22, 1  ;;  %v456_v63 = vsel %vm430_vm13, %v2672_v39, %v455_v33  ;;  %v833_v52 = vmul.f32 %v807_v55, %v781_v22  ;;  %1191 = vmatpush.msra.mxu3 %v1020_v16  ;;  %v2676_v59 = vsub.f32 2.0, %v2675_v14  ;;  %v2679_v55 = vld [vmem:[#allocation53_spill] sm:$0xff] }
 0x115   :  { %v683_v47 = vrot.slane %v545_v37, 1  ;;  %v756_v44 = vmul.f32 %v694_v10, %v2674_v24  ;;  %v597_v51 = vmul.f32 %v2677_v32, %v545_v37  ;;  %v2678_v40 = vmov %v2663_v4  ;;  %v2683_v4 = vld [vmem:[#allocation51_spill] sm:$0xff]  ;;  %v2697_v24 = vld [vmem:[#allocation42_spill] sm:$0xff] }
 0x116   :  { %v926_v54 = vsel %vm430_vm13, %v921_v15, %v925_v12  ;;  %v520_v19 = vmul.f32 %v456_v63, %v2676_v59  ;;  %v2680_v13 = vrot.slane %v2679_v55, 1  ;;  %1192 = vmatpush.msra.mxu3 %v1018_v5  ;;  %v2681_v12 = vsub.f32 1.5, %v2677_v32  ;;  %v2694_v63 = vld [vmem:[#allocation63_spill] sm:$0xff]  ;;  %v2704_v55 = vld [vmem:[#allocation46_spill] sm:$0xff] }
 0x117   :  { %v989_v28 = vmul.f32 %v926_v54, %v859_v34  ;;  %v688_v33 = vsel %vm430_vm13, %v683_v47, %v687_v1  ;;  %v782_v46 = vadd.f32 %v756_v44, %v600_v36  ;;  %v2684_v2 = vsub.f32 2.0, %v2683_v4  ;;  %v2695_v10 = vld [vmem:[#allocation47_spill] sm:$0xff]  ;;  %v2706_v4 = vld [vmem:[#allocation58_spill] sm:$0xff] }
 0x118   :  { %v450_v48 = vsel %vm430_vm13, %v2680_v13, %v2678_v40  ;;  %v753_v17 = vmul.f32 %v688_v33, %v2681_v12  ;;  %v546_v50 = vadd.f32 %v520_v19, %v2682_v45  ;;  %v624_v27 = vsub.f32 1.5, %v2685_v60  ;;  %v2701_v33 = vld [vmem:[#allocation40_spill] sm:$0xff] }
 0x119   :  { %v517_v34 = vmul.f32 %v450_v48, %v2684_v2  ;;  %v1015_v31 = vadd.f32 %v989_v28, %v833_v52  ;;  %v860_v1 = vsub.f32 1.3333334, %v808_v41  ;;  %v2686_v8 = vmov %v2672_v39 }
 0x11a   :  { %v2688_v7 = vrot.slane %v2687_v9, 1  ;;  %v923_v56 = vrot.slane %v782_v46, 1  ;;  %v779_v0 = vadd.f32 %v753_v17, %v597_v51  ;;  %v857_v43 = vsub.f32 1.3333334, %v805_v57 }
 0x11b   :  { %v806_v42 = vmul.f32 0.8333333, %v2689_v49  ;;  %1173 = vmatpush.msra.mxu2 %v1015_v31  ;;  %v685_v29 = vrot.slane %v546_v50, 1  ;;  %v543_v30 = vadd.f32 %v517_v34, %v2690_v35  ;;  %v803_v6 = vmul.f32 0.8333333, %v2691_v3 }
 0x11c   :  { %v452_v58 = vsel %vm430_vm13, %v2688_v7, %v2686_v8  ;;  %v2693_v18 = vsub.f32 2.0, %v2692_v26  ;;  %v834_v61 = vmul.f32 %v808_v41, %v782_v46  ;;  %v928_v22 = vsel %vm430_vm13, %v923_v56, %v927_v23 }
 0x11d   :  { %v917_v21 = vrot.slane %v779_v0, 1  ;;  %v598_v11 = vmul.f32 %v2685_v60, %v546_v50  ;;  %v990_v25 = vmul.f32 %v928_v22, %v860_v1  ;;  %v831_v37 = vmul.f32 %v805_v57, %v779_v0  ;;  %v2709_v1 = vld [vmem:[#allocation43_spill] sm:$0xff] }
 0x11e   :  { %v518_v62 = vmul.f32 %v452_v58, %v2693_v18  ;;  %v690_v16 = vsel %vm430_vm13, %v685_v29, %v689_v20  ;;  %v679_v36 = vrot.slane %v543_v30, 1  ;;  %v804_v53 = vmul.f32 0.8333333, %v2695_v10  ;;  %v2699_v20 = vld [vmem:[#allocation54_spill] sm:$0xff] }
 0x11f   :  { %v922_v38 = vsel %vm430_vm13, %v917_v21, %v921_v15  ;;  %v754_v39 = vmul.f32 %v690_v16, %v624_v27  ;;  %v1016_v5 = vadd.f32 %v990_v25, %v834_v61  ;;  %v2696_v23 = vmov %v2680_v13  ;;  %v2708_v27 = vld [vmem:[#allocation45_spill] sm:$0xff] }
 0x120   :  { %v544_v52 = vadd.f32 %v518_v62, %v2694_v63  ;;  %v987_v54 = vmul.f32 %v922_v38, %v857_v43  ;;  %v684_v41 = vsel %vm430_vm13, %v679_v36, %v683_v47  ;;  %v2698_v44 = vrot.slane %v2697_v24, 1  ;;  %v2711_v43 = vld [vmem:[#allocation35_spill] sm:$0xff]  ;;  %v2712_v62 = vld [vmem:[#allocation48_spill] sm:$0xff] }
 0x121   :  { %v780_v14 = vadd.f32 %v754_v39, %v598_v11  ;;  %v595_v59 = vmul.f32 %v2699_v20, %v543_v30  ;;  %v2700_v15 = vsub.f32 1.5, %v2699_v20  ;;  %1193 = vmatpush.msra.mxu3 %v1016_v5  ;;  %v858_v51 = vsub.f32 1.3333334, %v806_v42  ;;  %v2714_v11 = vld [vmem:[#allocation31_spill] sm:$0xff]  ;;  %v2716_v39 = vld [vmem:[#allocation38_spill] sm:$0xff] }
 0x122   :  { %v446_v57 = vsel %vm430_vm13, %v2698_v44, %v2696_v23  ;;  %v681_v28 = vrot.slane %v544_v52, 1  ;;  %v1013_v32 = vadd.f32 %v987_v54, %v831_v37  ;;  %v2702_v40 = vsub.f32 2.0, %v2701_v33 }
 0x123   :  { %v751_v19 = vmul.f32 %v684_v41, %v2700_v15  ;;  %v2703_v47 = vmov %v2688_v7  ;;  %v2705_v48 = vrot.slane %v2704_v55, 1  ;;  %v919_v12 = vrot.slane %v780_v14, 1 }
 0x124   :  { %v515_v13 = vmul.f32 %v446_v57, %v2702_v40  ;;  %v855_v45 = vsub.f32 1.3333334, %v803_v6  ;;  %v686_v50 = vsel %vm430_vm13, %v681_v28, %v685_v29  ;;  %1174 = vmatpush.msra.mxu2 %v1013_v32  ;;  %v596_v2 = vmul.f32 %v2706_v4, %v544_v52  ;;  %v2725_v40 = vld [vmem:[#allocation49_spill] sm:$0xff] }
 0x125   :  { %v448_v46 = vsel %vm430_vm13, %v2705_v48, %v2703_v47  ;;  %v777_v17 = vadd.f32 %v751_v19, %v595_v59  ;;  %v2707_v34 = vsub.f32 1.5, %v2706_v4  ;;  %v2710_v8 = vsub.f32 2.0, %v2709_v1  ;;  %v2721_v59 = vld [vmem:[#allocation36_spill] sm:$0xff] }
 0x126   :  { %v541_v31 = vadd.f32 %v515_v13, %v2708_v27  ;;  %v924_v7 = vsel %vm430_vm13, %v919_v12, %v923_v56  ;;  %v856_v0 = vsub.f32 1.3333334, %v804_v53  ;;  %v801_v49 = vmul.f32 0.8333333, %v2711_v43  ;;  %v2731_v27 = vld [vmem:[#allocation39_spill] sm:$0xff]  ;;  %v2734_v43 = vld [vmem:[#allocation20_spill] sm:$0xff] }
 0x127   :  { %v752_v60 = vmul.f32 %v686_v50, %v2707_v34  ;;  %v516_v9 = vmul.f32 %v448_v46, %v2710_v8  ;;  %v913_v58 = vrot.slane %v777_v17, 1  ;;  %v832_v35 = vmul.f32 %v806_v42, %v780_v14  ;;  %v2717_v42 = vld [vmem:[#allocation41_spill] sm:$0xff] }
 0x128   :  { %v988_v30 = vmul.f32 %v924_v7, %v858_v51  ;;  %v829_v29 = vmul.f32 %v803_v6, %v777_v17  ;;  %v675_v18 = vrot.slane %v541_v31, 1  ;;  %v2713_v22 = vmov %v2698_v44  ;;  %v2729_v17 = vld [vmem:[#allocation33_spill] sm:$0xff] }
 0x129   :  { %v778_v3 = vadd.f32 %v752_v60, %v596_v2  ;;  %v918_v26 = vsel %vm430_vm13, %v913_v58, %v917_v21  ;;  %v542_v61 = vadd.f32 %v516_v9, %v2712_v62  ;;  %v2715_v25 = vrot.slane %v2714_v11, 1  ;;  %v2718_v21 = vld [vmem:[#allocation30_spill] sm:$0xff]  ;;  %v2732_v9 = vld [vmem:[#allocation27_spill] sm:$0xff] }
 0x12a   :  { %v1014_v56 = vadd.f32 %v988_v30, %v832_v35  ;;  %v985_v16 = vmul.f32 %v918_v26, %v855_v45  ;;  %v802_v63 = vmul.f32 0.8333333, %v2716_v39  ;;  %v593_v52 = vmul.f32 %v2717_v42, %v541_v31  ;;  %v2730_v45 = vld [vmem:[#allocation34_spill] sm:$0xff] }
 0x12b   :  { %v442_v37 = vsel %vm430_vm13, %v2715_v25, %v2713_v22  ;;  %v915_v38 = vrot.slane %v778_v3, 1  ;;  %v680_v6 = vsel %vm430_vm13, %v675_v18, %v679_v36  ;;  %v677_v10 = vrot.slane %v542_v61, 1  ;;  %v2723_v36 = vld [vmem:[#allocation37_spill] sm:$0xff] }
 0x12c   :  { %v2719_v5 = vsub.f32 2.0, %v2718_v21  ;;  %1194 = vmatpush.msra.mxu3 %v1014_v56  ;;  %v1011_v41 = vadd.f32 %v985_v16, %v829_v29  ;;  %v830_v23 = vmul.f32 %v804_v53, %v778_v3  ;;  %v2720_v44 = vsub.f32 1.5, %v2717_v42 }
 0x12d   :  { %v920_v24 = vsel %vm430_vm13, %v915_v38, %v919_v12  ;;  %v682_v20 = vsel %vm430_vm13, %v677_v10, %v681_v28  ;;  %v2722_v19 = vmov %v2705_v48  ;;  %v2724_v32 = vrot.slane %v2723_v36, 1  ;;  %v2727_v48 = vld [vmem:[#allocation32_spill] sm:$0xff] }
 0x12e   :  { %v513_v54 = vmul.f32 %v442_v37, %v2719_v5  ;;  %v749_v57 = vmul.f32 %v680_v6, %v2720_v44  ;;  %v986_v14 = vmul.f32 %v920_v24, %v856_v0  ;;  %1175 = vmatpush.msra.mxu2 %v1011_v41  ;;  %v594_v53 = vmul.f32 %v2725_v40, %v542_v61  ;;  %v2736_v37 = vld [vmem:[#allocation18_spill] sm:$0xff] }
 0x12f   :  { %v444_v51 = vsel %vm430_vm13, %v2724_v32, %v2722_v19  ;;  %v2726_v13 = vsub.f32 1.5, %v2725_v40  ;;  %v2728_v46 = vsub.f32 2.0, %v2727_v48  ;;  %v617_v28 = vsub.f32 1.5, %v2729_v17  ;;  %v2747_v40 = vld [vmem:[#allocation6_spill] sm:$0xff] }
 0x130   :  { %v539_v15 = vadd.f32 %v513_v54, %v2721_v59  ;;  %v775_v33 = vadd.f32 %v749_v57, %v593_v52  ;;  %v618_v50 = vsub.f32 1.5, %v2730_v45  ;;  %v1012_v4 = vadd.f32 %v986_v14, %v830_v23  ;;  %v2739_v52 = vld [vmem:[#allocation26_spill] sm:$0xff]  ;;  %v2744_v59 = vld [vmem:[#allocation28_spill] sm:$0xff] }
 0x131   :  { %v750_v47 = vmul.f32 %v682_v20, %v2726_v13  ;;  %v514_v12 = vmul.f32 %v444_v51, %v2728_v46  ;;  %v853_v2 = vsub.f32 1.3333334, %v801_v49  ;;  %v854_v1 = vsub.f32 1.3333334, %v802_v63  ;;  %v2745_v51 = vld [vmem:[#allocation29_spill] sm:$0xff] }
 0x132   :  { %v671_v55 = vrot.slane %v539_v15, 1  ;;  %v909_v34 = vrot.slane %v775_v33, 1  ;;  %1195 = vmatpush.msra.mxu3 %v1012_v4  ;;  %v799_v7 = vmul.f32 0.8333333, %v2732_v9  ;;  %v2733_v0 = vmov %v2715_v25  ;;  %v2754_v9 = vld [vmem:[#allocation12_spill] sm:$0xff] }
 0x133   :  { %v776_v60 = vadd.f32 %v750_v47, %v594_v53  ;;  %v540_v31 = vadd.f32 %v514_v12, %v2731_v27  ;;  %v2735_v35 = vrot.slane %v2734_v43, 1  ;;  %v591_v26 = vmul.f32 %v2729_v17, %v539_v15  ;;  %v2749_v12 = vld [vmem:[#allocation4_spill] sm:$0xff] }
 0x134   :  { %v676_v8 = vsel %vm430_vm13, %v671_v55, %v675_v18  ;;  %v914_v29 = vsel %vm430_vm13, %v909_v34, %v913_v58  ;;  %v827_v61 = vmul.f32 %v801_v49, %v775_v33  ;;  %v2737_v56 = vsub.f32 2.0, %v2736_v37  ;;  %v2741_v49 = vld [vmem:[#allocation25_spill] sm:$0xff] }
 0x135   :  { %v438_v30 = vsel %vm430_vm13, %v2735_v35, %v2733_v0  ;;  %v911_v3 = vrot.slane %v776_v60, 1  ;;  %v747_v62 = vmul.f32 %v676_v8, %v617_v28  ;;  %v983_v22 = vmul.f32 %v914_v29, %v853_v2  ;;  %v2757_v29 = vld [vmem:[#allocation9_spill] sm:$0xff] }
 0x136   :  { %v673_v25 = vrot.slane %v540_v31, 1  ;;  %v511_v18 = vmul.f32 %v438_v30, %v2737_v56  ;;  %v828_v16 = vmul.f32 %v802_v63, %v776_v60  ;;  %v2738_v42 = vmov %v2724_v32  ;;  %v2742_v63 = vld [vmem:[#allocation23_spill] sm:$0xff] }
 0x137   :  { %v916_v39 = vsel %vm430_vm13, %v911_v3, %v915_v38  ;;  %v773_v11 = vadd.f32 %v747_v62, %v591_v26  ;;  %v2740_v6 = vrot.slane %v2739_v52, 1  ;;  %v1009_v21 = vadd.f32 %v983_v22, %v827_v61  ;;  %v2753_v60 = vld [vmem:[#allocation11_spill] sm:$0xff] }
 0x138   :  { %v984_v5 = vmul.f32 %v916_v39, %v854_v1  ;;  %v678_v54 = vsel %vm430_vm13, %v673_v25, %v677_v10  ;;  %v537_v41 = vadd.f32 %v511_v18, %v2741_v49  ;;  %v592_v24 = vmul.f32 %v2730_v45, %v540_v31 }
 0x139   :  { %v440_v58 = vsel %vm430_vm13, %v2740_v6, %v2738_v42  ;;  %v905_v23 = vrot.slane %v773_v11, 1  ;;  %v748_v44 = vmul.f32 %v678_v54, %v618_v50  ;;  %v2743_v57 = vsub.f32 2.0, %v2742_v63  ;;  %1176 = vmatpush.msra.mxu2 %v1009_v21  ;;  %v2751_v50 = vld [vmem:[#allocation22_spill] sm:$0xff] }
 0x13a   :  { %v1010_v14 = vadd.f32 %v984_v5, %v828_v16  ;;  %v851_v20 = vsub.f32 1.3333334, %v799_v7  ;;  %v800_v15 = vmul.f32 0.8333333, %v2744_v59  ;;  %v666_v19 = vrot.slane %v537_v41, 1 }
 0x13b   :  { %v512_v38 = vmul.f32 %v440_v58, %v2743_v57  ;;  %v910_v36 = vsel %vm430_vm13, %v905_v23, %v909_v34  ;;  %v774_v32 = vadd.f32 %v748_v44, %v592_v24  ;;  %v2746_v33 = vmov %v2735_v35  ;;  %v2760_v58 = vld [vmem:[#allocation7_spill] sm:$0xff] }
 0x13c   :  { %v2748_v53 = vrot.slane %v2747_v40, 1  ;;  %1196 = vmatpush.msra.mxu3 %v1010_v14  ;;  %v825_v47 = vmul.f32 %v799_v7, %v773_v11  ;;  %v981_v48 = vmul.f32 %v910_v36, %v851_v20  ;;  %v672_v46 = vsel %vm430_vm13, %v666_v19, %v671_v55  ;;  %v2755_v7 = vld [vmem:[#allocation24_spill] sm:$0xff]  ;;  %v2765_v20 = vld [vmem:[#allocation15_spill] sm:$0xff] }
 0x13d   :  { %v538_v10 = vadd.f32 %v512_v38, %v2745_v51  ;;  %v2750_v17 = vsub.f32 2.0, %v2749_v12  ;;  %v907_v45 = vrot.slane %v774_v32, 1  ;;  %v589_v4 = vmul.f32 %v2751_v50, %v537_v41  ;;  %v2762_v41 = vld [vmem:[#allocation5_spill] sm:$0xff]  ;;  %v2764_v38 = vld [vmem:[#allocation2_spill] sm:$0xff] }
 0x13e   :  { %v433_v13 = vsel %vm430_vm13, %v2748_v53, %v2746_v33  ;;  %v2752_v2 = vsub.f32 1.5, %v2751_v50  ;;  %v797_v27 = vmul.f32 0.8333333, %v2753_v60  ;;  %v1007_v31 = vadd.f32 %v981_v48, %v825_v47 }
 0x13f   :  { %v509_v28 = vmul.f32 %v433_v13, %v2750_v17  ;;  %v852_v1 = vsub.f32 1.3333334, %v800_v15  ;;  %v669_v8 = vrot.slane %v538_v10, 1  ;;  %v616_v43 = vsub.f32 1.5, %v2755_v7 }
 0x140   :  { %v745_v34 = vmul.f32 %v672_v46, %v2752_v2  ;;  %v912_v55 = vsel %vm430_vm13, %v907_v45, %v911_v3  ;;  %v2756_v30 = vmov %v2740_v6  ;;  %v2758_v26 = vrot.slane %v2757_v29, 1  ;;  %1177 = vmatpush.msra.mxu2 %v1007_v31  ;;  %v2759_v3 = vld [vmem:[#allocation14_spill] sm:$0xff]  ;;  %v2767_v2 = vld [vmem:[#allocation3_spill] sm:$0xff] }
 0x141   :  { %v535_v0 = vadd.f32 %v509_v28, %v2754_v9  ;;  %v826_v61 = vmul.f32 %v800_v15, %v774_v32  ;;  %v982_v22 = vmul.f32 %v912_v55, %v852_v1  ;;  %v674_v37 = vsel %vm430_vm13, %v669_v8, %v673_v25 }
 0x142   :  { %v771_v35 = vadd.f32 %v745_v34, %v589_v4  ;;  %v436_v62 = vsel %vm430_vm13, %v2758_v26, %v2756_v30  ;;  %v849_v18 = vsub.f32 1.3333334, %v797_v27  ;;  %v590_v39 = vmul.f32 %v2755_v7, %v538_v10  ;;  %v2766_v10 = vld [vmem:[#allocation8_spill] sm:$0xff] }
 0x143   :  { %v665_v56 = vrot.slane %v535_v0, 1  ;;  %v746_v11 = vmul.f32 %v674_v37, %v616_v43  ;;  %v1008_v42 = vadd.f32 %v982_v22, %v826_v61  ;;  %v798_v6 = vmul.f32 0.8333333, %v2759_v3 }
 0x144   :  { %v900_v16 = vrot.slane %v771_v35, 1  ;;  %v2761_v21 = vsub.f32 2.0, %v2760_v58  ;;  %v587_v24 = vmul.f32 %v2762_v41, %v535_v0  ;;  %v2763_v25 = vsub.f32 1.5, %v2762_v41 }
 0x145   :  { %v667_v52 = vsel %vm430_vm13, %v665_v56, %v666_v19  ;;  %v772_v49 = vadd.f32 %v746_v11, %v590_v39  ;;  %1197 = vmatpush.msra.mxu3 %v1008_v42  ;;  %v823_v63 = vmul.f32 %v797_v27, %v771_v35  ;;  %v795_v14 = vmul.f32 0.8333333, %v2764_v38  ;;  %v1029_v27 = vld [vmem:[%s2442_s4] sm:$0xff] }
 0x146   :  { %v510_v5 = vmul.f32 %v436_v62, %v2761_v21  ;;  %v906_v54 = vsel %vm430_vm13, %v900_v16, %v905_v23  ;;  %v743_v44 = vmul.f32 %v667_v52, %v2763_v25  ;;  %v850_v32 = vsub.f32 1.3333334, %v798_v6 }
 0x147   :  { %v979_v57 = vmul.f32 %v906_v54, %v849_v18  ;;  %v903_v15 = vrot.slane %v772_v49, 1  ;;  %v614_v23 = vsub.f32 1.5, %v2766_v10  ;;  %v824_v53 = vmul.f32 %v798_v6, %v772_v49 }
 0x148   :  { %v536_v59 = vadd.f32 %v510_v5, %v2765_v20  ;;  %v769_v19 = vadd.f32 %v743_v44, %v587_v24  ;;  %v847_v47 = vsub.f32 1.3333334, %v795_v14  ;;  %v796_v34 = vmul.f32 0.8333333, %v2767_v2 }
 0x149   :  { %v1005_v36 = vadd.f32 %v979_v57, %v823_v63  ;;  %v908_v33 = vsel %vm430_vm13, %v903_v15, %v907_v45  ;;  %vm1160_vm1 = vcmask 850944  }
 0x14a   :  { %v668_v51 = vrot.slane %v536_v59, 1  ;;  %v899_v40 = vrot.slane %v769_v19, 1  ;;  %v980_v13 = vmul.f32 %v908_v33, %v850_v32  ;;  %v588_v12 = vmul.f32 %v2766_v10, %v536_v59 }
 0x14b   :  { %1178 = vmatpush.msra.mxu2 %v1005_v36  ;;  %v821_v50 = vmul.f32 %v795_v14, %v769_v19  ;;  %v848_v1 = vsub.f32 1.3333334, %v796_v34 }
 0x14c   :  { %v670_v48 = vsel %vm430_vm13, %v668_v51, %v669_v8  ;;  %v901_v46 = vsel %vm430_vm13, %v899_v40, %v900_v16  ;;  %v1006_v28 = vadd.f32 %v980_v13, %v824_v53 }
 0x14d   :  { %v744_v17 = vmul.f32 %v670_v48, %v614_v23  ;;  %v977_v4 = vmul.f32 %v901_v46, %v847_v47 }
 0x14e   :  { %1198 = vmatpush.msra.mxu3 %v1006_v28 }
 0x14f   :  { %v770_v60 = vadd.f32 %v744_v17, %v588_v12  ;;  %v1003_v45 = vadd.f32 %v977_v4, %v821_v50 }
 0x151   :  { %v902_v31 = vrot.slane %v770_v60, 1  ;;  %1179 = vmatpush.msra.mxu2 %v1003_v45  ;;  %v822_v9 = vmul.f32 %v796_v34, %v770_v60 }
 0x152   :  { %1272 = vmatmul.msk.f32.vlgmr.msra.gmra.mxu2 %vm1160_vm1, %v1029_v27 }
 0x153   :  { %v904_v8 = vsel %vm430_vm13, %v902_v31, %v903_v15 }
 0x154   :  { %v978_v0 = vmul.f32 %v904_v8, %v848_v1 }
 0x156   :  { %v1004_v7 = vadd.f32 %v978_v0, %v822_v9 }
 0x158   :  { %1199 = vmatpush.msra.mxu3 %v1004_v7 }
 0x159   :  { %1273 = vmatmul.msk.f32.vlgmr.msra.gmra.mxu3 %vm1160_vm1, %v1029_v27 }
 0x18b   :  { %v1137_v43 = vpop.f32.mrf.mxu2 }
 0x18c   :  { %v1157_v55 = vpop.f32.mrf.mxu3 }
 0x1d5   :  { %v1181_v35 = vpop.f32.mrf.mxu2 }
 0x1d6   :  { %v1182_v30 = vadd.f32 %v1181_v35, %v1137_v43 }
 0x1dc   :  { %v1201_v29 = vpop.f32.mrf.mxu3 }
 0x1dd   :  { %v1202_v26 = vadd.f32 %v1201_v29, %v1157_v55 }
 0x1df   :  { %v1204_v62 = vmax.f32 %v1182_v30, %v1202_v26 }
 0x1e1   :  { %1205 = vst [vmem:[%s2443_s5] sm:$0xff] %v1204_v62 }

</bundles_post_ra>
